<compile_context>
chip_gen: v5e
topology: v5e:2x2
jax: 0.10.0
libtpu: 0.0.40
codegen_flags: <defaults>
</compile_context>

<pallas_src>
import functools

import jax
import jax.numpy as jnp
from jax.experimental import pallas as pl
from jax.experimental.pallas import tpu as pltpu

CONV_KH, CONV_KW = 20, 5
CONV_SH, CONV_SW = 8, 2
CONV_COUT = 32


# ------------------------------ params ------------------------------------- #

def init_params(key, image_height, image_width, hidden_dim, num_classes):
    Wo = (image_width - CONV_KW) // CONV_SW + 1
    feat = CONV_COUT * Wo
    H = hidden_dim
    ks = jax.random.split(key, 17)

    def rnd(k, shape, scale=0.1):
        return (scale * jax.random.normal(k, shape)).astype(jnp.float32)

    return dict(
        conv_w=rnd(ks[0], (CONV_COUT, 1, CONV_KH, CONV_KW)),
        conv_b=rnd(ks[1], (CONV_COUT,)),
        w_ih_l0=rnd(ks[2], (4 * H, feat)),
        w_hh_l0=rnd(ks[3], (4 * H, H)),
        b_ih_l0=rnd(ks[4], (4 * H,)),
        b_hh_l0=rnd(ks[5], (4 * H,)),
        w_ih_l1=rnd(ks[6], (4 * H, H)),
        w_hh_l1=rnd(ks[7], (4 * H, H)),
        b_ih_l1=rnd(ks[8], (4 * H,)),
        b_hh_l1=rnd(ks[9], (4 * H,)),
        weight_W=rnd(ks[10], (H, H)),
        bias=rnd(ks[11], (H, 1)),
        weight_proj=rnd(ks[12], (H, 1)),
        dnn1_w=rnd(ks[13], (64, H)),
        dnn1_b=rnd(ks[14], (64,)),
        out_w=rnd(ks[15], (num_classes, 64)),
        out_b=rnd(ks[16], (num_classes,)),
    )


def prepare_params(params, image_width, hidden_dim, num_classes):
    """One-time weight packing into MXU-friendly bf16 layouts (outside the hot path)."""
    H = hidden_dim
    K = CONV_KH * CONV_KW
    bf16 = jnp.bfloat16
    f32 = jnp.float32

    # lane-dense output: pad the class dim to a multiple of 128 (sliced back in the wrapper)
    out_lanes = ((num_classes + 127) // 128) * 128
    wo_pad = jnp.zeros((64, out_lanes), f32).at[:, :num_classes].set(params['out_w'].T)
    bo_pad = jnp.zeros((1, out_lanes), f32).at[:, :num_classes].set(params['out_b'][None, :])

    return dict(
        # conv as the single shared (K, Cout) weight — no kron'd block-diagonal zeros
        wconv=params['conv_w'].reshape(CONV_COUT, K).T.astype(bf16),          # (K, Cout)
        bconv=params['conv_b'].reshape(1, CONV_COUT).astype(f32),
        wih0=params['w_ih_l0'].T.astype(bf16),                                # (F, 4H)
        b0=(params['b_ih_l0'] + params['b_hh_l0']).reshape(1, 4 * H).astype(f32),
        whh0=params['w_hh_l0'].T.astype(bf16),                                # (H, 4H)
        whh1=params['w_hh_l1'].T.astype(bf16),                                # (H, 4H)
        wih1=params['w_ih_l1'].T.astype(bf16),                                # (H, 4H)
        b1=(params['b_ih_l1'] + params['b_hh_l1']).reshape(1, 4 * H).astype(f32),
        watt=params['weight_W'].astype(bf16),                                 # (H, H)
        batt=params['bias'].reshape(1, H).astype(f32),
        wproj=params['weight_proj'].reshape(1, H).astype(f32),                # VPU row, f32
        wd=params['dnn1_w'].T.astype(bf16),                                   # (H, 64)
        bd=params['dnn1_b'].reshape(1, 64).astype(f32),
        wo=wo_pad.astype(bf16),                                               # (64, out_lanes)
        bo=bo_pad,                                                            # (1, out_lanes) f32
    )


# --------------------------- fused Pallas forward --------------------------- #

def speech_res_model_forward(packed, x, *, hidden_dim, num_classes):
    B, _, Hin, Win = x.shape
    T = (Hin - CONV_KH) // CONV_SH + 1
    Wo = (Win - CONV_KW) // CONV_SW + 1
    H = hidden_dim
    K = CONV_KH * CONV_KW
    TB = T * B
    out_lanes = packed['bo'].shape[1]

    # ---- im2col glue: rows ordered (w, t, b) so each w-block is a sublane-aligned slab ----
    rows = (jnp.arange(T) * CONV_SH)[:, None] + jnp.arange(CONV_KH)[None, :]   # (T, KH)
    cols = (jnp.arange(Wo) * CONV_SW)[:, None] + jnp.arange(CONV_KW)[None, :]  # (Wo, KW)
    x2 = x[:, 0]                                    # (B, Hin, Win)
    p = x2[:, rows, :]                              # (B, T, KH, Win)
    p = p[:, :, :, cols]                            # (B, T, KH, Wo, KW)
    p = jnp.transpose(p, (3, 1, 0, 2, 4))           # (Wo, T, B, KH, KW)
    patches = p.reshape(Wo * TB, K).astype(jnp.bfloat16)

    def kernel(p_ref, wc_ref, bc_ref, wih0_ref, b0_ref,
               whh0_ref, whh1_ref, wih1_ref, b1_ref,
               watt_ref, batt_ref, wproj_ref,
               wd_ref, bd_ref, wout_ref, bout_ref, out_ref):
        f32 = jnp.float32
        bf16 = jnp.bfloat16

        # conv1: one shared-weight bf16 matmul (f32 accumulate) + relu over all patch rows
        conv = jnp.maximum(
            jnp.dot(p_ref[...], wc_ref[...], preferred_element_type=f32) + bc_ref[...],
            0.0)                                                            # (Wo*T*B, Cout)
        # regroup the w-major row blocks into the time-major LSTM input (T*B, Wo*Cout);
        # each slice starts on a multiple of T*B rows, one lane-concat, off the serial chain.
        conv_seq = jnp.concatenate(
            [conv[w * TB:(w + 1) * TB, :] for w in range(Wo)], axis=1)      # (T*B, F)

        # layer-0 input projection hoisted out of the recurrent loop
        xproj = (jnp.dot(conv_seq.astype(bf16), wih0_ref[...],
                         preferred_element_type=f32) + b0_ref[...])         # (T*B, 4H)

        # weight/bias loads hoisted above the time loop
        whh0 = whh0_ref[...]
        whh1 = whh1_ref[...]
        wih1 = wih1_ref[...]
        b1 = b1_ref[...]

        def gates_to_hc(g, c_prev):
            # PyTorch LSTM gate order: i, f, g, o — all elementwise math stays f32
            i = jax.nn.sigmoid(g[:, 0 * H:1 * H])
            f = jax.nn.sigmoid(g[:, 1 * H:2 * H])
            gg = jnp.tanh(g[:, 2 * H:3 * H])
            o = jax.nn.sigmoid(g[:, 3 * H:4 * H])
            c_new = f * c_prev + i * gg
            return o * jnp.tanh(c_new), c_new

        zeros = jnp.zeros((B, H), f32)
        h0, c0, h1, c1 = zeros, zeros, zeros, zeros
        hs = []
        # statically unrolled time loop (T is small) — everything stays vreg resident.
        # TODO(synk): if H/B grow so T*B*4H f32 approaches the 64-vreg file, spill xproj to a
        #             VMEM scratch and switch to lax.fori_loop(unroll=True) with carried (h, c).
        for t in range(T):
            # split recurrent dots: no [h0|h1] lane concat on the serial chain; the h1@Whh1
            # push only feeds g1 and can overlap layer-0 gate nonlinearities (MXU is idle).
            rec1 = jnp.dot(h1.astype(bf16), whh1, preferred_element_type=f32)
            g0 = (xproj[t * B:(t + 1) * B, :]
                  + jnp.dot(h0.astype(bf16), whh0, preferred_element_type=f32))
            h0, c0 = gates_to_hc(g0, c0)
            # TODO(synk): nn.LSTM inter-layer dropout(0.2) omitted (train-only; identity at eval).
            g1 = jnp.dot(h0.astype(bf16), wih1, preferred_element_type=f32) + b1 + rec1
            h1, c1 = gates_to_hc(g1, c1)
            hs.append(h1)

        # attention: one batched squish matmul; projection on VPU+XLU (no N=1 MXU dot)
        outs2d = jnp.concatenate(hs, axis=0)                                # (T*B, H)
        squish = jnp.tanh(jnp.dot(outs2d.astype(bf16), watt_ref[...],
                                  preferred_element_type=f32) + batt_ref[...])
        logits = jnp.sum(squish * wproj_ref[...], axis=-1, keepdims=True)   # (T*B, 1)

        # softmax over time per batch element + attention-weighted sum of the layer-1 outputs
        lts = [logits[t * B:(t + 1) * B, :] for t in range(T)]              # each (B, 1)
        m = lts[0]
        for t in range(1, T):
            m = jnp.maximum(m, lts[t])
        es = [jnp.exp(l - m) for l in lts]
        z = es[0]
        ctx = es[0] * hs[0]
        for t in range(1, T):
            z = z + es[t]
            ctx = ctx + es[t] * hs[t]
        ctx = ctx / z                                                       # (B, H)

        d1 = (jnp.dot(ctx.astype(bf16), wd_ref[...], preferred_element_type=f32)
              + bd_ref[...])
        # TODO(synk): nn.Dropout(0.5) omitted (train-only; identity at eval).
        out_ref[...] = (jnp.dot(d1.astype(bf16), wout_ref[...],
                                preferred_element_type=f32) + bout_ref[...])

    args = (patches, packed['wconv'], packed['bconv'],
            packed['wih0'], packed['b0'],
            packed['whh0'], packed['whh1'], packed['wih1'], packed['b1'],
            packed['watt'], packed['batt'], packed['wproj'],
            packed['wd'], packed['bd'], packed['wo'], packed['bo'])

    vmem = pl.BlockSpec(memory_space=pltpu.MemorySpace.VMEM)

    feat = CONV_COUT * Wo
    flops = (2 * Wo * TB * K * CONV_COUT                # conv matmul
             + 2 * TB * feat * 4 * H                    # layer-0 input projection
             + T * 3 * (2 * B * H * 4 * H)              # 3 recurrent dots per step
             + 2 * TB * H * H                           # attention squish
             + 2 * TB * H                               # attention logits (VPU)
             + 2 * B * H * 64 + 2 * B * 64 * out_lanes)  # MLP head
    transcendentals = 10 * T * B * H + TB * H + TB       # gate sigm/tanh, squish tanh, exp
    bytes_accessed = (sum(int(a.size) * a.dtype.itemsize for a in args)
                      + B * out_lanes * 4)

    out = pl.pallas_call(
        kernel,
        out_shape=jax.ShapeDtypeStruct((B, out_lanes), jnp.float32),
        in_specs=[vmem] * len(args),
        out_specs=vmem,
        cost_estimate=pl.CostEstimate(flops=int(flops),
                                      transcendentals=int(transcendentals),
                                      bytes_accessed=int(bytes_accessed)),
    )(*args)
    return out[:, :num_classes]


# --------------------------- pure-JAX reference ----------------------------- #

def reference_forward(params, x, hidden_dim):
    B, _, Hin, Win = x.shape
    T = (Hin - CONV_KH) // CONV_SH + 1
    Wo = (Win - CONV_KW) // CONV_SW + 1
    H = hidden_dim

    conv = jax.lax.conv_general_dilated(
        x.astype(jnp.float32), params['conv_w'],
        window_strides=(CONV_SH, CONV_SW), padding='VALID',
        dimension_numbers=('NCHW', 'OIHW', 'NCHW'))
    conv = jax.nn.relu(conv + params['conv_b'][None, :, None, None])
    xs = jnp.transpose(conv, (0, 2, 3, 1)).reshape(B, T, Wo * CONV_COUT)
    xs = jnp.transpose(xs, (1, 0, 2))                                     # (T,B,F)

    def lstm_step(x_t, h, c, wih, whh, bih, bhh):
        g = x_t @ wih.T + bih + h @ whh.T + bhh
        i = jax.nn.sigmoid(g[:, :H]); f = jax.nn.sigmoid(g[:, H:2 * H])
        gg = jnp.tanh(g[:, 2 * H:3 * H]); o = jax.nn.sigmoid(g[:, 3 * H:])
        c = f * c + i * gg
        return o * jnp.tanh(c), c

    h0 = jnp.zeros((B, H)); c0 = jnp.zeros((B, H))
    h1 = jnp.zeros((B, H)); c1 = jnp.zeros((B, H))
    outs = []
    for t in range(T):
        h0, c0 = lstm_step(xs[t], h0, c0, params['w_ih_l0'], params['w_hh_l0'],
                           params['b_ih_l0'], params['b_hh_l0'])
        h1, c1 = lstm_step(h0, h1, c1, params['w_ih_l1'], params['w_hh_l1'],
                           params['b_ih_l1'], params['b_hh_l1'])
        outs.append(h1)
    outs = jnp.stack(outs, axis=0)                                        # (T,B,H)

    squish = jnp.tanh(jnp.einsum('tbh,hg->tbg', outs, params['weight_W'])
                      + params['bias'][:, 0][None, None, :])
    attn = jnp.einsum('tbg,gk->tbk', squish, params['weight_proj'])[:, :, 0]  # (T,B)
    attn = jax.nn.softmax(attn, axis=0)
    ctx = jnp.sum(attn[:, :, None] * outs, axis=0)                        # (B,H)
    d1 = ctx @ params['dnn1_w'].T + params['dnn1_b']
    return d1 @ params['out_w'].T + params['out_b']


# ---------------------------------- main ------------------------------------ #

if __name__ == "__main__":
    key = jax.random.PRNGKey(0)
    k_x, k_p = jax.random.split(key)

    B, IMG_H, IMG_W = 2, 44, 13          # -> conv out T=4, Wo=5, lstm_input_size=160
    HIDDEN, NUM_CLASSES = 32, 12

    x = jax.random.normal(k_x, (B, 1, IMG_H, IMG_W), dtype=jnp.float32)
    params = init_params(k_p, IMG_H, IMG_W, HIDDEN, NUM_CLASSES)
    packed = prepare_params(params, IMG_W, HIDDEN, NUM_CLASSES)

    fwd = jax.jit(functools.partial(speech_res_model_forward,
                                    hidden_dim=HIDDEN, num_classes=NUM_CLASSES))
    out = fwd(packed, x)
    out = jax.block_until_ready(out)

    ref = reference_forward(params, x, HIDDEN)
    assert out.shape == (B, NUM_CLASSES)
    assert bool(jnp.all(jnp.isfinite(out)))
    # tolerance absorbs bf16 weight storage + default TPU bf16-pass matmul precision
    assert bool(jnp.allclose(out, ref, atol=3e-2, rtol=3e-2))

    print("KERNEL_OK")
</pallas_src>

<mosaic_0001>
module attributes {stable_mosaic.version = 11 : i64} {
  func.func @kernel(%arg0: memref<40x100xbf16, #tpu.memory_space<vmem>>, %arg1: memref<100x32xbf16, #tpu.memory_space<vmem>>, %arg2: memref<1x32xf32, #tpu.memory_space<vmem>>, %arg3: memref<160x128xbf16, #tpu.memory_space<vmem>>, %arg4: memref<1x128xf32, #tpu.memory_space<vmem>>, %arg5: memref<32x128xbf16, #tpu.memory_space<vmem>>, %arg6: memref<32x128xbf16, #tpu.memory_space<vmem>>, %arg7: memref<32x128xbf16, #tpu.memory_space<vmem>>, %arg8: memref<1x128xf32, #tpu.memory_space<vmem>>, %arg9: memref<32x32xbf16, #tpu.memory_space<vmem>>, %arg10: memref<1x32xf32, #tpu.memory_space<vmem>>, %arg11: memref<1x32xf32, #tpu.memory_space<vmem>>, %arg12: memref<32x64xbf16, #tpu.memory_space<vmem>>, %arg13: memref<1x64xf32, #tpu.memory_space<vmem>>, %arg14: memref<64x128xbf16, #tpu.memory_space<vmem>>, %arg15: memref<1x128xf32, #tpu.memory_space<vmem>>, %arg16: memref<2x128xf32, #tpu.memory_space<vmem>>) attributes {dimension_semantics = [], scalar_prefetch = 0 : i64, scratch_operands = 0 : i64, tpu.core_type = #tpu.core_type<tc>} {
    %c0 = arith.constant 0 : index
    %c0_0 = arith.constant 0 : index
    %0 = vector.load %arg0[%c0, %c0_0] : memref<40x100xbf16, #tpu.memory_space<vmem>>, vector<40x100xbf16>
    %c0_1 = arith.constant 0 : index
    %c0_2 = arith.constant 0 : index
    %1 = vector.load %arg1[%c0_1, %c0_2] : memref<100x32xbf16, #tpu.memory_space<vmem>>, vector<100x32xbf16>
    %cst = arith.constant dense<0.000000e+00> : vector<40x32xf32>
    %2 = tpu.matmul %0, %1, %cst {dimension_numbers = #tpu.dot_dimension_numbers<[1], [0], [0], [1], [0, 0, 1, 1], [], []>} : vector<40x100xbf16>, vector<100x32xbf16>, vector<40x32xf32> -> vector<40x32xf32>
    %c0_3 = arith.constant 0 : index
    %c0_4 = arith.constant 0 : index
    %3 = vector.load %arg2[%c0_3, %c0_4] : memref<1x32xf32, #tpu.memory_space<vmem>>, vector<1x32xf32>
    %4 = vector.broadcast %3 : vector<1x32xf32> to vector<40x32xf32>
    %5 = arith.addf %2, %4 : vector<40x32xf32>
    %cst_5 = arith.constant 0.000000e+00 : f32
    %6 = vector.broadcast %cst_5 : f32 to vector<40x32xf32>
    %7 = arith.maximumf %5, %6 : vector<40x32xf32>
    %8 = vector.extract_strided_slice %7 {offsets = [0, 0], sizes = [8, 32], strides = [1, 1]} : vector<40x32xf32> to vector<8x32xf32>
    %9 = vector.extract_strided_slice %7 {offsets = [8, 0], sizes = [8, 32], strides = [1, 1]} : vector<40x32xf32> to vector<8x32xf32>
    %10 = vector.extract_strided_slice %7 {offsets = [16, 0], sizes = [8, 32], strides = [1, 1]} : vector<40x32xf32> to vector<8x32xf32>
    %11 = vector.extract_strided_slice %7 {offsets = [24, 0], sizes = [8, 32], strides = [1, 1]} : vector<40x32xf32> to vector<8x32xf32>
    %12 = vector.extract_strided_slice %7 {offsets = [32, 0], sizes = [8, 32], strides = [1, 1]} : vector<40x32xf32> to vector<8x32xf32>
    %13 = tpu.concatenate %8, %9, %10, %11, %12 in 1 : vector<8x32xf32>, vector<8x32xf32>, vector<8x32xf32>, vector<8x32xf32>, vector<8x32xf32> -> vector<8x160xf32>
    %14 = arith.truncf %13 : vector<8x160xf32> to vector<8x160xbf16>
    %c0_6 = arith.constant 0 : index
    %c0_7 = arith.constant 0 : index
    %15 = vector.load %arg3[%c0_6, %c0_7] : memref<160x128xbf16, #tpu.memory_space<vmem>>, vector<160x128xbf16>
    %cst_8 = arith.constant dense<0.000000e+00> : vector<8x128xf32>
    %16 = tpu.matmul %14, %15, %cst_8 {dimension_numbers = #tpu.dot_dimension_numbers<[1], [0], [0], [1], [0, 0, 1, 1], [], []>} : vector<8x160xbf16>, vector<160x128xbf16>, vector<8x128xf32> -> vector<8x128xf32>
    %c0_9 = arith.constant 0 : index
    %c0_10 = arith.constant 0 : index
    %17 = vector.load %arg4[%c0_9, %c0_10] : memref<1x128xf32, #tpu.memory_space<vmem>>, vector<1x128xf32>
    %18 = vector.broadcast %17 : vector<1x128xf32> to vector<8x128xf32>
    %19 = arith.addf %16, %18 : vector<8x128xf32>
    %c0_11 = arith.constant 0 : index
    %c0_12 = arith.constant 0 : index
    %20 = vector.load %arg5[%c0_11, %c0_12] : memref<32x128xbf16, #tpu.memory_space<vmem>>, vector<32x128xbf16>
    %c0_13 = arith.constant 0 : index
    %c0_14 = arith.constant 0 : index
    %21 = vector.load %arg6[%c0_13, %c0_14] : memref<32x128xbf16, #tpu.memory_space<vmem>>, vector<32x128xbf16>
    %c0_15 = arith.constant 0 : index
    %c0_16 = arith.constant 0 : index
    %22 = vector.load %arg7[%c0_15, %c0_16] : memref<32x128xbf16, #tpu.memory_space<vmem>>, vector<32x128xbf16>
    %c0_17 = arith.constant 0 : index
    %c0_18 = arith.constant 0 : index
    %23 = vector.load %arg8[%c0_17, %c0_18] : memref<1x128xf32, #tpu.memory_space<vmem>>, vector<1x128xf32>
    %cst_19 = arith.constant 0.000000e+00 : f32
    %24 = vector.broadcast %cst_19 : f32 to vector<2x32xf32>
    %25 = arith.truncf %24 : vector<2x32xf32> to vector<2x32xbf16>
    %cst_20 = arith.constant dense<0.000000e+00> : vector<2x128xf32>
    %26 = tpu.matmul %25, %21, %cst_20 {dimension_numbers = #tpu.dot_dimension_numbers<[1], [0], [0], [1], [0, 0, 1, 1], [], []>} : vector<2x32xbf16>, vector<32x128xbf16>, vector<2x128xf32> -> vector<2x128xf32>
    %27 = vector.extract_strided_slice %19 {offsets = [0, 0], sizes = [2, 128], strides = [1, 1]} : vector<8x128xf32> to vector<2x128xf32>
    %28 = arith.truncf %24 : vector<2x32xf32> to vector<2x32xbf16>
    %cst_21 = arith.constant dense<0.000000e+00> : vector<2x128xf32>
    %29 = tpu.matmul %28, %20, %cst_21 {dimension_numbers = #tpu.dot_dimension_numbers<[1], [0], [0], [1], [0, 0, 1, 1], [], []>} : vector<2x32xbf16>, vector<32x128xbf16>, vector<2x128xf32> -> vector<2x128xf32>
    %30 = arith.addf %27, %29 : vector<2x128xf32>
    %31 = vector.extract_strided_slice %30 {offsets = [0, 0], sizes = [2, 32], strides = [1, 1]} : vector<2x128xf32> to vector<2x32xf32>
    %32 = arith.negf %31 : vector<2x32xf32>
    %33 = math.exp %32 : vector<2x32xf32>
    %cst_22 = arith.constant 1.000000e+00 : f32
    %34 = vector.broadcast %cst_22 : f32 to vector<2x32xf32>
    %35 = arith.addf %34, %33 : vector<2x32xf32>
    %36 = arith.divf %34, %35 : vector<2x32xf32>
    %37 = vector.extract_strided_slice %30 {offsets = [0, 32], sizes = [2, 32], strides = [1, 1]} : vector<2x128xf32> to vector<2x32xf32>
    %38 = arith.negf %37 : vector<2x32xf32>
    %39 = math.exp %38 : vector<2x32xf32>
    %cst_23 = arith.constant 1.000000e+00 : f32
    %40 = vector.broadcast %cst_23 : f32 to vector<2x32xf32>
    %41 = arith.addf %40, %39 : vector<2x32xf32>
    %42 = arith.divf %40, %41 : vector<2x32xf32>
    %43 = vector.extract_strided_slice %30 {offsets = [0, 64], sizes = [2, 32], strides = [1, 1]} : vector<2x128xf32> to vector<2x32xf32>
    %44 = math.tanh %43 : vector<2x32xf32>
    %45 = vector.extract_strided_slice %30 {offsets = [0, 96], sizes = [2, 32], strides = [1, 1]} : vector<2x128xf32> to vector<2x32xf32>
    %46 = arith.negf %45 : vector<2x32xf32>
    %47 = math.exp %46 : vector<2x32xf32>
    %cst_24 = arith.constant 1.000000e+00 : f32
    %48 = vector.broadcast %cst_24 : f32 to vector<2x32xf32>
    %49 = arith.addf %48, %47 : vector<2x32xf32>
    %50 = arith.divf %48, %49 : vector<2x32xf32>
    %51 = arith.mulf %42, %24 : vector<2x32xf32>
    %52 = arith.mulf %36, %44 : vector<2x32xf32>
    %53 = arith.addf %51, %52 : vector<2x32xf32>
    %54 = math.tanh %53 : vector<2x32xf32>
    %55 = arith.mulf %50, %54 : vector<2x32xf32>
    %56 = arith.truncf %55 : vector<2x32xf32> to vector<2x32xbf16>
    %cst_25 = arith.constant dense<0.000000e+00> : vector<2x128xf32>
    %57 = tpu.matmul %56, %22, %cst_25 {dimension_numbers = #tpu.dot_dimension_numbers<[1], [0], [0], [1], [0, 0, 1, 1], [], []>} : vector<2x32xbf16>, vector<32x128xbf16>, vector<2x128xf32> -> vector<2x128xf32>
    %58 = vector.broadcast %23 : vector<1x128xf32> to vector<2x128xf32>
    %59 = arith.addf %57, %58 : vector<2x128xf32>
    %60 = arith.addf %59, %26 : vector<2x128xf32>
    %61 = vector.extract_strided_slice %60 {offsets = [0, 0], sizes = [2, 32], strides = [1, 1]} : vector<2x128xf32> to vector<2x32xf32>
    %62 = arith.negf %61 : vector<2x32xf32>
    %63 = math.exp %62 : vector<2x32xf32>
    %cst_26 = arith.constant 1.000000e+00 : f32
    %64 = vector.broadcast %cst_26 : f32 to vector<2x32xf32>
    %65 = arith.addf %64, %63 : vector<2x32xf32>
    %66 = arith.divf %64, %65 : vector<2x32xf32>
    %67 = vector.extract_strided_slice %60 {offsets = [0, 32], sizes = [2, 32], strides = [1, 1]} : vector<2x128xf32> to vector<2x32xf32>
    %68 = arith.negf %67 : vector<2x32xf32>
    %69 = math.exp %68 : vector<2x32xf32>
    %cst_27 = arith.constant 1.000000e+00 : f32
    %70 = vector.broadcast %cst_27 : f32 to vector<2x32xf32>
    %71 = arith.addf %70, %69 : vector<2x32xf32>
    %72 = arith.divf %70, %71 : vector<2x32xf32>
    %73 = vector.extract_strided_slice %60 {offsets = [0, 64], sizes = [2, 32], strides = [1, 1]} : vector<2x128xf32> to vector<2x32xf32>
    %74 = math.tanh %73 : vector<2x32xf32>
    %75 = vector.extract_strided_slice %60 {offsets = [0, 96], sizes = [2, 32], strides = [1, 1]} : vector<2x128xf32> to vector<2x32xf32>
    %76 = arith.negf %75 : vector<2x32xf32>
    %77 = math.exp %76 : vector<2x32xf32>
    %cst_28 = arith.constant 1.000000e+00 : f32
    %78 = vector.broadcast %cst_28 : f32 to vector<2x32xf32>
    %79 = arith.addf %78, %77 : vector<2x32xf32>
    %80 = arith.divf %78, %79 : vector<2x32xf32>
    %81 = arith.mulf %72, %24 : vector<2x32xf32>
    %82 = arith.mulf %66, %74 : vector<2x32xf32>
    %83 = arith.addf %81, %82 : vector<2x32xf32>
    %84 = math.tanh %83 : vector<2x32xf32>
    %85 = arith.mulf %80, %84 : vector<2x32xf32>
    %86 = arith.truncf %85 : vector<2x32xf32> to vector<2x32xbf16>
    %cst_29 = arith.constant dense<0.000000e+00> : vector<2x128xf32>
    %87 = tpu.matmul %86, %21, %cst_29 {dimension_numbers = #tpu.dot_dimension_numbers<[1], [0], [0], [1], [0, 0, 1, 1], [], []>} : vector<2x32xbf16>, vector<32x128xbf16>, vector<2x128xf32> -> vector<2x128xf32>
    %88 = vector.extract_strided_slice %19 {offsets = [2, 0], sizes = [2, 128], strides = [1, 1]} : vector<8x128xf32> to vector<2x128xf32>
    %89 = arith.truncf %55 : vector<2x32xf32> to vector<2x32xbf16>
    %cst_30 = arith.constant dense<0.000000e+00> : vector<2x128xf32>
    %90 = tpu.matmul %89, %20, %cst_30 {dimension_numbers = #tpu.dot_dimension_numbers<[1], [0], [0], [1], [0, 0, 1, 1], [], []>} : vector<2x32xbf16>, vector<32x128xbf16>, vector<2x128xf32> -> vector<2x128xf32>
    %91 = arith.addf %88, %90 : vector<2x128xf32>
    %92 = vector.extract_strided_slice %91 {offsets = [0, 0], sizes = [2, 32], strides = [1, 1]} : vector<2x128xf32> to vector<2x32xf32>
    %93 = arith.negf %92 : vector<2x32xf32>
    %94 = math.exp %93 : vector<2x32xf32>
    %cst_31 = arith.constant 1.000000e+00 : f32
    %95 = vector.broadcast %cst_31 : f32 to vector<2x32xf32>
    %96 = arith.addf %95, %94 : vector<2x32xf32>
    %97 = arith.divf %95, %96 : vector<2x32xf32>
    %98 = vector.extract_strided_slice %91 {offsets = [0, 32], sizes = [2, 32], strides = [1, 1]} : vector<2x128xf32> to vector<2x32xf32>
    %99 = arith.negf %98 : vector<2x32xf32>
    %100 = math.exp %99 : vector<2x32xf32>
    %cst_32 = arith.constant 1.000000e+00 : f32
    %101 = vector.broadcast %cst_32 : f32 to vector<2x32xf32>
    %102 = arith.addf %101, %100 : vector<2x32xf32>
    %103 = arith.divf %101, %102 : vector<2x32xf32>
    %104 = vector.extract_strided_slice %91 {offsets = [0, 64], sizes = [2, 32], strides = [1, 1]} : vector<2x128xf32> to vector<2x32xf32>
    %105 = math.tanh %104 : vector<2x32xf32>
    %106 = vector.extract_strided_slice %91 {offsets = [0, 96], sizes = [2, 32], strides = [1, 1]} : vector<2x128xf32> to vector<2x32xf32>
    %107 = arith.negf %106 : vector<2x32xf32>
    %108 = math.exp %107 : vector<2x32xf32>
    %cst_33 = arith.constant 1.000000e+00 : f32
    %109 = vector.broadcast %cst_33 : f32 to vector<2x32xf32>
    %110 = arith.addf %109, %108 : vector<2x32xf32>
    %111 = arith.divf %109, %110 : vector<2x32xf32>
    %112 = arith.mulf %103, %53 : vector<2x32xf32>
    %113 = arith.mulf %97, %105 : vector<2x32xf32>
    %114 = arith.addf %112, %113 : vector<2x32xf32>
    %115 = math.tanh %114 : vector<2x32xf32>
    %116 = arith.mulf %111, %115 : vector<2x32xf32>
    %117 = arith.truncf %116 : vector<2x32xf32> to vector<2x32xbf16>
    %cst_34 = arith.constant dense<0.000000e+00> : vector<2x128xf32>
    %118 = tpu.matmul %117, %22, %cst_34 {dimension_numbers = #tpu.dot_dimension_numbers<[1], [0], [0], [1], [0, 0, 1, 1], [], []>} : vector<2x32xbf16>, vector<32x128xbf16>, vector<2x128xf32> -> vector<2x128xf32>
    %119 = vector.broadcast %23 : vector<1x128xf32> to vector<2x128xf32>
    %120 = arith.addf %118, %119 : vector<2x128xf32>
    %121 = arith.addf %120, %87 : vector<2x128xf32>
    %122 = vector.extract_strided_slice %121 {offsets = [0, 0], sizes = [2, 32], strides = [1, 1]} : vector<2x128xf32> to vector<2x32xf32>
    %123 = arith.negf %122 : vector<2x32xf32>
    %124 = math.exp %123 : vector<2x32xf32>
    %cst_35 = arith.constant 1.000000e+00 : f32
    %125 = vector.broadcast %cst_35 : f32 to vector<2x32xf32>
    %126 = arith.addf %125, %124 : vector<2x32xf32>
    %127 = arith.divf %125, %126 : vector<2x32xf32>
    %128 = vector.extract_strided_slice %121 {offsets = [0, 32], sizes = [2, 32], strides = [1, 1]} : vector<2x128xf32> to vector<2x32xf32>
    %129 = arith.negf %128 : vector<2x32xf32>
    %130 = math.exp %129 : vector<2x32xf32>
    %cst_36 = arith.constant 1.000000e+00 : f32
    %131 = vector.broadcast %cst_36 : f32 to vector<2x32xf32>
    %132 = arith.addf %131, %130 : vector<2x32xf32>
    %133 = arith.divf %131, %132 : vector<2x32xf32>
    %134 = vector.extract_strided_slice %121 {offsets = [0, 64], sizes = [2, 32], strides = [1, 1]} : vector<2x128xf32> to vector<2x32xf32>
    %135 = math.tanh %134 : vector<2x32xf32>
    %136 = vector.extract_strided_slice %121 {offsets = [0, 96], sizes = [2, 32], strides = [1, 1]} : vector<2x128xf32> to vector<2x32xf32>
    %137 = arith.negf %136 : vector<2x32xf32>
    %138 = math.exp %137 : vector<2x32xf32>
    %cst_37 = arith.constant 1.000000e+00 : f32
    %139 = vector.broadcast %cst_37 : f32 to vector<2x32xf32>
    %140 = arith.addf %139, %138 : vector<2x32xf32>
    %141 = arith.divf %139, %140 : vector<2x32xf32>
    %142 = arith.mulf %133, %83 : vector<2x32xf32>
    %143 = arith.mulf %127, %135 : vector<2x32xf32>
    %144 = arith.addf %142, %143 : vector<2x32xf32>
    %145 = math.tanh %144 : vector<2x32xf32>
    %146 = arith.mulf %141, %145 : vector<2x32xf32>
    %147 = arith.truncf %146 : vector<2x32xf32> to vector<2x32xbf16>
    %cst_38 = arith.constant dense<0.000000e+00> : vector<2x128xf32>
    %148 = tpu.matmul %147, %21, %cst_38 {dimension_numbers = #tpu.dot_dimension_numbers<[1], [0], [0], [1], [0, 0, 1, 1], [], []>} : vector<2x32xbf16>, vector<32x128xbf16>, vector<2x128xf32> -> vector<2x128xf32>
    %149 = vector.extract_strided_slice %19 {offsets = [4, 0], sizes = [2, 128], strides = [1, 1]} : vector<8x128xf32> to vector<2x128xf32>
    %150 = arith.truncf %116 : vector<2x32xf32> to vector<2x32xbf16>
    %cst_39 = arith.constant dense<0.000000e+00> : vector<2x128xf32>
    %151 = tpu.matmul %150, %20, %cst_39 {dimension_numbers = #tpu.dot_dimension_numbers<[1], [0], [0], [1], [0, 0, 1, 1], [], []>} : vector<2x32xbf16>, vector<32x128xbf16>, vector<2x128xf32> -> vector<2x128xf32>
    %152 = arith.addf %149, %151 : vector<2x128xf32>
    %153 = vector.extract_strided_slice %152 {offsets = [0, 0], sizes = [2, 32], strides = [1, 1]} : vector<2x128xf32> to vector<2x32xf32>
    %154 = arith.negf %153 : vector<2x32xf32>
    %155 = math.exp %154 : vector<2x32xf32>
    %cst_40 = arith.constant 1.000000e+00 : f32
    %156 = vector.broadcast %cst_40 : f32 to vector<2x32xf32>
    %157 = arith.addf %156, %155 : vector<2x32xf32>
    %158 = arith.divf %156, %157 : vector<2x32xf32>
    %159 = vector.extract_strided_slice %152 {offsets = [0, 32], sizes = [2, 32], strides = [1, 1]} : vector<2x128xf32> to vector<2x32xf32>
    %160 = arith.negf %159 : vector<2x32xf32>
    %161 = math.exp %160 : vector<2x32xf32>
    %cst_41 = arith.constant 1.000000e+00 : f32
    %162 = vector.broadcast %cst_41 : f32 to vector<2x32xf32>
    %163 = arith.addf %162, %161 : vector<2x32xf32>
    %164 = arith.divf %162, %163 : vector<2x32xf32>
    %165 = vector.extract_strided_slice %152 {offsets = [0, 64], sizes = [2, 32], strides = [1, 1]} : vector<2x128xf32> to vector<2x32xf32>
    %166 = math.tanh %165 : vector<2x32xf32>
    %167 = vector.extract_strided_slice %152 {offsets = [0, 96], sizes = [2, 32], strides = [1, 1]} : vector<2x128xf32> to vector<2x32xf32>
    %168 = arith.negf %167 : vector<2x32xf32>
    %169 = math.exp %168 : vector<2x32xf32>
    %cst_42 = arith.constant 1.000000e+00 : f32
    %170 = vector.broadcast %cst_42 : f32 to vector<2x32xf32>
    %171 = arith.addf %170, %169 : vector<2x32xf32>
    %172 = arith.divf %170, %171 : vector<2x32xf32>
    %173 = arith.mulf %164, %114 : vector<2x32xf32>
    %174 = arith.mulf %158, %166 : vector<2x32xf32>
    %175 = arith.addf %173, %174 : vector<2x32xf32>
    %176 = math.tanh %175 : vector<2x32xf32>
    %177 = arith.mulf %172, %176 : vector<2x32xf32>
    %178 = arith.truncf %177 : vector<2x32xf32> to vector<2x32xbf16>
    %cst_43 = arith.constant dense<0.000000e+00> : vector<2x128xf32>
    %179 = tpu.matmul %178, %22, %cst_43 {dimension_numbers = #tpu.dot_dimension_numbers<[1], [0], [0], [1], [0, 0, 1, 1], [], []>} : vector<2x32xbf16>, vector<32x128xbf16>, vector<2x128xf32> -> vector<2x128xf32>
    %180 = vector.broadcast %23 : vector<1x128xf32> to vector<2x128xf32>
    %181 = arith.addf %179, %180 : vector<2x128xf32>
    %182 = arith.addf %181, %148 : vector<2x128xf32>
    %183 = vector.extract_strided_slice %182 {offsets = [0, 0], sizes = [2, 32], strides = [1, 1]} : vector<2x128xf32> to vector<2x32xf32>
    %184 = arith.negf %183 : vector<2x32xf32>
    %185 = math.exp %184 : vector<2x32xf32>
    %cst_44 = arith.constant 1.000000e+00 : f32
    %186 = vector.broadcast %cst_44 : f32 to vector<2x32xf32>
    %187 = arith.addf %186, %185 : vector<2x32xf32>
    %188 = arith.divf %186, %187 : vector<2x32xf32>
    %189 = vector.extract_strided_slice %182 {offsets = [0, 32], sizes = [2, 32], strides = [1, 1]} : vector<2x128xf32> to vector<2x32xf32>
    %190 = arith.negf %189 : vector<2x32xf32>
    %191 = math.exp %190 : vector<2x32xf32>
    %cst_45 = arith.constant 1.000000e+00 : f32
    %192 = vector.broadcast %cst_45 : f32 to vector<2x32xf32>
    %193 = arith.addf %192, %191 : vector<2x32xf32>
    %194 = arith.divf %192, %193 : vector<2x32xf32>
    %195 = vector.extract_strided_slice %182 {offsets = [0, 64], sizes = [2, 32], strides = [1, 1]} : vector<2x128xf32> to vector<2x32xf32>
    %196 = math.tanh %195 : vector<2x32xf32>
    %197 = vector.extract_strided_slice %182 {offsets = [0, 96], sizes = [2, 32], strides = [1, 1]} : vector<2x128xf32> to vector<2x32xf32>
    %198 = arith.negf %197 : vector<2x32xf32>
    %199 = math.exp %198 : vector<2x32xf32>
    %cst_46 = arith.constant 1.000000e+00 : f32
    %200 = vector.broadcast %cst_46 : f32 to vector<2x32xf32>
    %201 = arith.addf %200, %199 : vector<2x32xf32>
    %202 = arith.divf %200, %201 : vector<2x32xf32>
    %203 = arith.mulf %194, %144 : vector<2x32xf32>
    %204 = arith.mulf %188, %196 : vector<2x32xf32>
    %205 = arith.addf %203, %204 : vector<2x32xf32>
    %206 = math.tanh %205 : vector<2x32xf32>
    %207 = arith.mulf %202, %206 : vector<2x32xf32>
    %208 = arith.truncf %207 : vector<2x32xf32> to vector<2x32xbf16>
    %cst_47 = arith.constant dense<0.000000e+00> : vector<2x128xf32>
    %209 = tpu.matmul %208, %21, %cst_47 {dimension_numbers = #tpu.dot_dimension_numbers<[1], [0], [0], [1], [0, 0, 1, 1], [], []>} : vector<2x32xbf16>, vector<32x128xbf16>, vector<2x128xf32> -> vector<2x128xf32>
    %210 = vector.extract_strided_slice %19 {offsets = [6, 0], sizes = [2, 128], strides = [1, 1]} : vector<8x128xf32> to vector<2x128xf32>
    %211 = arith.truncf %177 : vector<2x32xf32> to vector<2x32xbf16>
    %cst_48 = arith.constant dense<0.000000e+00> : vector<2x128xf32>
    %212 = tpu.matmul %211, %20, %cst_48 {dimension_numbers = #tpu.dot_dimension_numbers<[1], [0], [0], [1], [0, 0, 1, 1], [], []>} : vector<2x32xbf16>, vector<32x128xbf16>, vector<2x128xf32> -> vector<2x128xf32>
    %213 = arith.addf %210, %212 : vector<2x128xf32>
    %214 = vector.extract_strided_slice %213 {offsets = [0, 0], sizes = [2, 32], strides = [1, 1]} : vector<2x128xf32> to vector<2x32xf32>
    %215 = arith.negf %214 : vector<2x32xf32>
    %216 = math.exp %215 : vector<2x32xf32>
    %cst_49 = arith.constant 1.000000e+00 : f32
    %217 = vector.broadcast %cst_49 : f32 to vector<2x32xf32>
    %218 = arith.addf %217, %216 : vector<2x32xf32>
    %219 = arith.divf %217, %218 : vector<2x32xf32>
    %220 = vector.extract_strided_slice %213 {offsets = [0, 32], sizes = [2, 32], strides = [1, 1]} : vector<2x128xf32> to vector<2x32xf32>
    %221 = arith.negf %220 : vector<2x32xf32>
    %222 = math.exp %221 : vector<2x32xf32>
    %cst_50 = arith.constant 1.000000e+00 : f32
    %223 = vector.broadcast %cst_50 : f32 to vector<2x32xf32>
    %224 = arith.addf %223, %222 : vector<2x32xf32>
    %225 = arith.divf %223, %224 : vector<2x32xf32>
    %226 = vector.extract_strided_slice %213 {offsets = [0, 64], sizes = [2, 32], strides = [1, 1]} : vector<2x128xf32> to vector<2x32xf32>
    %227 = math.tanh %226 : vector<2x32xf32>
    %228 = vector.extract_strided_slice %213 {offsets = [0, 96], sizes = [2, 32], strides = [1, 1]} : vector<2x128xf32> to vector<2x32xf32>
    %229 = arith.negf %228 : vector<2x32xf32>
    %230 = math.exp %229 : vector<2x32xf32>
    %cst_51 = arith.constant 1.000000e+00 : f32
    %231 = vector.broadcast %cst_51 : f32 to vector<2x32xf32>
    %232 = arith.addf %231, %230 : vector<2x32xf32>
    %233 = arith.divf %231, %232 : vector<2x32xf32>
    %234 = arith.mulf %225, %175 : vector<2x32xf32>
    %235 = arith.mulf %219, %227 : vector<2x32xf32>
    %236 = arith.addf %234, %235 : vector<2x32xf32>
    %237 = math.tanh %236 : vector<2x32xf32>
    %238 = arith.mulf %233, %237 : vector<2x32xf32>
    %239 = arith.truncf %238 : vector<2x32xf32> to vector<2x32xbf16>
    %cst_52 = arith.constant dense<0.000000e+00> : vector<2x128xf32>
    %240 = tpu.matmul %239, %22, %cst_52 {dimension_numbers = #tpu.dot_dimension_numbers<[1], [0], [0], [1], [0, 0, 1, 1], [], []>} : vector<2x32xbf16>, vector<32x128xbf16>, vector<2x128xf32> -> vector<2x128xf32>
    %241 = vector.broadcast %23 : vector<1x128xf32> to vector<2x128xf32>
    %242 = arith.addf %240, %241 : vector<2x128xf32>
    %243 = arith.addf %242, %209 : vector<2x128xf32>
    %244 = vector.extract_strided_slice %243 {offsets = [0, 0], sizes = [2, 32], strides = [1, 1]} : vector<2x128xf32> to vector<2x32xf32>
    %245 = arith.negf %244 : vector<2x32xf32>
    %246 = math.exp %245 : vector<2x32xf32>
    %cst_53 = arith.constant 1.000000e+00 : f32
    %247 = vector.broadcast %cst_53 : f32 to vector<2x32xf32>
    %248 = arith.addf %247, %246 : vector<2x32xf32>
    %249 = arith.divf %247, %248 : vector<2x32xf32>
    %250 = vector.extract_strided_slice %243 {offsets = [0, 32], sizes = [2, 32], strides = [1, 1]} : vector<2x128xf32> to vector<2x32xf32>
    %251 = arith.negf %250 : vector<2x32xf32>
    %252 = math.exp %251 : vector<2x32xf32>
    %cst_54 = arith.constant 1.000000e+00 : f32
    %253 = vector.broadcast %cst_54 : f32 to vector<2x32xf32>
    %254 = arith.addf %253, %252 : vector<2x32xf32>
    %255 = arith.divf %253, %254 : vector<2x32xf32>
    %256 = vector.extract_strided_slice %243 {offsets = [0, 64], sizes = [2, 32], strides = [1, 1]} : vector<2x128xf32> to vector<2x32xf32>
    %257 = math.tanh %256 : vector<2x32xf32>
    %258 = vector.extract_strided_slice %243 {offsets = [0, 96], sizes = [2, 32], strides = [1, 1]} : vector<2x128xf32> to vector<2x32xf32>
    %259 = arith.negf %258 : vector<2x32xf32>
    %260 = math.exp %259 : vector<2x32xf32>
    %cst_55 = arith.constant 1.000000e+00 : f32
    %261 = vector.broadcast %cst_55 : f32 to vector<2x32xf32>
    %262 = arith.addf %261, %260 : vector<2x32xf32>
    %263 = arith.divf %261, %262 : vector<2x32xf32>
    %264 = arith.mulf %255, %205 : vector<2x32xf32>
    %265 = arith.mulf %249, %257 : vector<2x32xf32>
    %266 = arith.addf %264, %265 : vector<2x32xf32>
    %267 = math.tanh %266 : vector<2x32xf32>
    %268 = arith.mulf %263, %267 : vector<2x32xf32>
    %269 = tpu.concatenate %85, %146, %207, %268 in 0 : vector<2x32xf32>, vector<2x32xf32>, vector<2x32xf32>, vector<2x32xf32> -> vector<8x32xf32>
    %270 = arith.truncf %269 : vector<8x32xf32> to vector<8x32xbf16>
    %c0_56 = arith.constant 0 : index
    %c0_57 = arith.constant 0 : index
    %271 = vector.load %arg9[%c0_56, %c0_57] : memref<32x32xbf16, #tpu.memory_space<vmem>>, vector<32x32xbf16>
    %cst_58 = arith.constant dense<0.000000e+00> : vector<8x32xf32>
    %272 = tpu.matmul %270, %271, %cst_58 {dimension_numbers = #tpu.dot_dimension_numbers<[1], [0], [0], [1], [0, 0, 1, 1], [], []>} : vector<8x32xbf16>, vector<32x32xbf16>, vector<8x32xf32> -> vector<8x32xf32>
    %c0_59 = arith.constant 0 : index
    %c0_60 = arith.constant 0 : index
    %273 = vector.load %arg10[%c0_59, %c0_60] : memref<1x32xf32, #tpu.memory_space<vmem>>, vector<1x32xf32>
    %274 = vector.broadcast %273 : vector<1x32xf32> to vector<8x32xf32>
    %275 = arith.addf %272, %274 : vector<8x32xf32>
    %276 = math.tanh %275 : vector<8x32xf32>
    %c0_61 = arith.constant 0 : index
    %c0_62 = arith.constant 0 : index
    %277 = vector.load %arg11[%c0_61, %c0_62] : memref<1x32xf32, #tpu.memory_space<vmem>>, vector<1x32xf32>
    %278 = vector.broadcast %277 : vector<1x32xf32> to vector<8x32xf32>
    %279 = arith.mulf %276, %278 : vector<8x32xf32>
    %cst_63 = arith.constant dense<0.000000e+00> : vector<8xf32>
    %280 = vector.multi_reduction <add>, %279, %cst_63 [1] : vector<8x32xf32> to vector<8xf32>
    %281 = vector.shape_cast %280 : vector<8xf32> to vector<8x1xf32>
    %282 = vector.extract_strided_slice %281 {offsets = [0, 0], sizes = [2, 1], strides = [1, 1]} : vector<8x1xf32> to vector<2x1xf32>
    %283 = vector.extract_strided_slice %281 {offsets = [2, 0], sizes = [2, 1], strides = [1, 1]} : vector<8x1xf32> to vector<2x1xf32>
    %284 = vector.extract_strided_slice %281 {offsets = [4, 0], sizes = [2, 1], strides = [1, 1]} : vector<8x1xf32> to vector<2x1xf32>
    %285 = vector.extract_strided_slice %281 {offsets = [6, 0], sizes = [2, 1], strides = [1, 1]} : vector<8x1xf32> to vector<2x1xf32>
    %286 = arith.maximumf %282, %283 : vector<2x1xf32>
    %287 = arith.maximumf %286, %284 : vector<2x1xf32>
    %288 = arith.maximumf %287, %285 : vector<2x1xf32>
    %289 = arith.subf %282, %288 : vector<2x1xf32>
    %290 = math.exp %289 : vector<2x1xf32>
    %291 = arith.subf %283, %288 : vector<2x1xf32>
    %292 = math.exp %291 : vector<2x1xf32>
    %293 = arith.subf %284, %288 : vector<2x1xf32>
    %294 = math.exp %293 : vector<2x1xf32>
    %295 = arith.subf %285, %288 : vector<2x1xf32>
    %296 = math.exp %295 : vector<2x1xf32>
    %297 = vector.broadcast %290 : vector<2x1xf32> to vector<2x32xf32>
    %298 = arith.mulf %297, %85 : vector<2x32xf32>
    %299 = arith.addf %290, %292 : vector<2x1xf32>
    %300 = vector.broadcast %292 : vector<2x1xf32> to vector<2x32xf32>
    %301 = arith.mulf %300, %146 : vector<2x32xf32>
    %302 = arith.addf %298, %301 : vector<2x32xf32>
    %303 = arith.addf %299, %294 : vector<2x1xf32>
    %304 = vector.broadcast %294 : vector<2x1xf32> to vector<2x32xf32>
    %305 = arith.mulf %304, %207 : vector<2x32xf32>
    %306 = arith.addf %302, %305 : vector<2x32xf32>
    %307 = arith.addf %303, %296 : vector<2x1xf32>
    %308 = vector.broadcast %296 : vector<2x1xf32> to vector<2x32xf32>
    %309 = arith.mulf %308, %268 : vector<2x32xf32>
    %310 = arith.addf %306, %309 : vector<2x32xf32>
    %311 = vector.broadcast %307 : vector<2x1xf32> to vector<2x32xf32>
    %312 = arith.divf %310, %311 : vector<2x32xf32>
    %313 = arith.truncf %312 : vector<2x32xf32> to vector<2x32xbf16>
    %c0_64 = arith.constant 0 : index
    %c0_65 = arith.constant 0 : index
    %314 = vector.load %arg12[%c0_64, %c0_65] : memref<32x64xbf16, #tpu.memory_space<vmem>>, vector<32x64xbf16>
    %cst_66 = arith.constant dense<0.000000e+00> : vector<2x64xf32>
    %315 = tpu.matmul %313, %314, %cst_66 {dimension_numbers = #tpu.dot_dimension_numbers<[1], [0], [0], [1], [0, 0, 1, 1], [], []>} : vector<2x32xbf16>, vector<32x64xbf16>, vector<2x64xf32> -> vector<2x64xf32>
    %c0_67 = arith.constant 0 : index
    %c0_68 = arith.constant 0 : index
    %316 = vector.load %arg13[%c0_67, %c0_68] : memref<1x64xf32, #tpu.memory_space<vmem>>, vector<1x64xf32>
    %317 = vector.broadcast %316 : vector<1x64xf32> to vector<2x64xf32>
    %318 = arith.addf %315, %317 : vector<2x64xf32>
    %319 = arith.truncf %318 : vector<2x64xf32> to vector<2x64xbf16>
    %c0_69 = arith.constant 0 : index
    %c0_70 = arith.constant 0 : index
    %320 = vector.load %arg14[%c0_69, %c0_70] : memref<64x128xbf16, #tpu.memory_space<vmem>>, vector<64x128xbf16>
    %cst_71 = arith.constant dense<0.000000e+00> : vector<2x128xf32>
    %321 = tpu.matmul %319, %320, %cst_71 {dimension_numbers = #tpu.dot_dimension_numbers<[1], [0], [0], [1], [0, 0, 1, 1], [], []>} : vector<2x64xbf16>, vector<64x128xbf16>, vector<2x128xf32> -> vector<2x128xf32>
    %c0_72 = arith.constant 0 : index
    %c0_73 = arith.constant 0 : index
    %322 = vector.load %arg15[%c0_72, %c0_73] : memref<1x128xf32, #tpu.memory_space<vmem>>, vector<1x128xf32>
    %323 = vector.broadcast %322 : vector<1x128xf32> to vector<2x128xf32>
    %324 = arith.addf %321, %323 : vector<2x128xf32>
    %c0_74 = arith.constant 0 : index
    %c0_75 = arith.constant 0 : index
    %325 = vector.load %arg16[%c0_74, %c0_75] : memref<2x128xf32, #tpu.memory_space<vmem>>, vector<2x128xf32>
    tpu.vector_store %arg16[%c0_74, %c0_75], %324 {strides = array<i32>} : memref<2x128xf32, #tpu.memory_space<vmem>>, vector<2x128xf32>,
    return
  }
}

</mosaic_0001>

<bundles_post_ra>
// kernel: speech_res_model_forward.1
= control target key start
LH: loop header
LB: loop body
LE: loop exit
PB: predicated region body
PF: predicated region fallthrough
CT: control target
= control target key end

     0   :  { %s1825_s0 = inlined_call_operand.vmem [shape: bf16[40,100], index: 0, kind: input, shape index: {}]   ;;  %s1826_s1 = inlined_call_operand.vmem [shape: bf16[100,32], index: 1, kind: input, shape index: {}]   ;;  %s1827_s2 = inlined_call_operand.vmem [shape: f32[1,32], index: 2, kind: input, shape index: {}]   ;;  %s1828_s3 = inlined_call_operand.vmem [shape: bf16[160,128], index: 3, kind: input, shape index: {}]   ;;  %s1829_s4 = inlined_call_operand.vmem [shape: f32[1,128], index: 4, kind: input, shape index: {}]   ;;  %s1830_s5 = inlined_call_operand.vmem [shape: bf16[32,128], index: 5, kind: input, shape index: {}]   ;;  %s1831_s6 = inlined_call_operand.vmem [shape: bf16[32,128], index: 6, kind: input, shape index: {}]   ;;  %s1832_s7 = inlined_call_operand.vmem [shape: bf16[32,128], index: 7, kind: input, shape index: {}]   ;;  %s1833_s8 = inlined_call_operand.vmem [shape: f32[1,128], index: 8, kind: input, shape index: {}]   ;;  %s1834_s9 = inlined_call_operand.vmem [shape: bf16[32,32], index: 9, kind: input, shape index: {}]   ;;  %s1835_s10 = inlined_call_operand.vmem [shape: f32[1,32], index: 10, kind: input, shape index: {}]   ;;  %s1836_s11 = inlined_call_operand.vmem [shape: f32[1,32], index: 11, kind: input, shape index: {}]   ;;  %s1837_s12 = inlined_call_operand.vmem [shape: bf16[32,64], index: 12, kind: input, shape index: {}]   ;;  %s1838_s13 = inlined_call_operand.vmem [shape: f32[1,64], index: 13, kind: input, shape index: {}]   ;;  %s1839_s14 = inlined_call_operand.vmem [shape: bf16[64,128], index: 14, kind: input, shape index: {}]   ;;  %s1840_s15 = inlined_call_operand.vmem [shape: f32[1,128], index: 15, kind: input, shape index: {}]   ;;  %s1841_s16 = inlined_call_operand.hbm [shape: f32[2,128], index: 16, kind: output, shape index: {}]  }
   0x1   :  { %1843 = sst [smem:[#allocation5_spill]] %s1825_s0 }
   0x2   :  { %v72_v0 = vld [vmem:[%s1826_s1 + $0x30] sm:$0x3]  ;;  %vm139_vm0 = vcmask 1041408  }
   0x3   :  { %v115_v1 = vunpack.c.l.b16 %v72_v0 }
   0x5   :  { %v122_v2 = vpack.c.b16 %v115_v1, %v115_v1 }
   0x7   :  { %v141_v3 = vsel %vm139_vm0, %v122_v2, 0 }
   0x8   :  { %21 = vsyncpa [#allocation3], 0  ;;  %144 = vmatpush.bf16.msra.mxu0 %v141_v3  ;;  %v1331_v4 = vld [vmem:[%s1826_s1 + $0x28] sm:$0xff]  ;;  %v1330_v5 = vld [vmem:[%s1826_s1 + $0x20] sm:$0xff]  ;;  %s1844_s22 = sld [smem:[#allocation5_spill]]  ;;  %vm129_vm1 = vcmask 818176  }
   0x9   :  { %v1329_v6 = vld [vmem:[%s1826_s1 + $0x18] sm:$0xff]  ;;  %v1328_v7 = vld [vmem:[%s1826_s1 + $0x10] sm:$0xff]  ;;  %v1327_v8 = vld [vmem:[%s1826_s1 + $0x8] sm:$0xff]  ;;  %s1473_s23 = smov 64   ;;  %s1474_s24 = smov 96   ;;  %vm183_vm2 = vcmask 261120  }
   0xa   :  { %v1326_v9 = vld [vmem:[%s1826_s1] sm:$0xff]  ;;  %v1341_v18 = vld [vmem:[%s1828_s3 + $0x48] sm:$0xff]  ;;  %v1339_v19 = vld [vmem:[%s1828_s3 + $0x38] sm:$0xff]  ;;  %v1475_v43 = vmov 0   ;;  %vm185_vm3 = vcmask 523264   ;;  %vm187_vm4 = vcmask 785408  }
   0xb   :  { %v1363_v15 = vld [vmem:[%s1827_s2] ss:$0 sm:$0xff]  ;;  %297 = vmatpush.bf16.msra.mxu2 %v1341_v18  ;;  %278 = vmatpush.bf16.msra.mxu1 %v1339_v19  ;;  %v1338_v21 = vld [vmem:[%s1828_s3 + $0x30] sm:$0xff]  ;;  %v1337_v25 = vld [vmem:[%s1828_s3 + $0x28] sm:$0xff]  ;;  %s1476_s30 = smov [#allocation2]  }
   0xc   :  { %145 = vmatpush.bf16.msra.mxu0 %v1331_v4  ;;  %v1340_v20 = vld [vmem:[%s1828_s3 + $0x40] sm:$0xff]  ;;  %v1621_v38 = vld [vmem:[%s1830_s5 + $0x8] sm:$0xff]  ;;  %v1335_v39 = vld [vmem:[%s1828_s3 + $0x18] sm:$0xff]  ;;  %1362 = vset.pattern.permute.xlu1 %v1475_v43 }
   0xd   :  { %v1336_v37 = vld [vmem:[%s1828_s3 + $0x20] sm:$0xff]  ;;  %v1334_v41 = vld [vmem:[%s1828_s3 + $0x10] sm:$0xff]  ;;  %v1333_v42 = vld [vmem:[%s1828_s3 + $0x8] sm:$0xff]  ;;  %1361 = vset.pattern.permute.xlu0 %v1475_v43 }
   0xe   :  { %v1324_v10 = vld [vmem:[%s1844_s22] sm:$0xff]  ;;  %v1325_v11 = vld [vmem:[%s1844_s22 + $0x8] sm:$0xff]  ;;  %v59_v12 = vld [vmem:[%s1844_s22 + $0x10] sm:$0xf]  ;;  %s1472_s22 = smov 32  }
   0xf   :  { %v86_v13 = vunpack.c.l.b16 %v59_v12  ;;  %298 = vmatpush.bf16.msra.mxu2 %v1340_v20  ;;  %279 = vmatpush.bf16.msra.mxu1 %v1338_v21  ;;  %v1630_v40 = vld [vmem:[%s1830_s5] sm:$0xff]  ;;  %v1662_v19 = vld [vmem:[%s1831_s6 + $0x8] sm:$0xff] }
  0x10   :  { %146 = vmatpush.bf16.msra.mxu0 %v1330_v5  ;;  %v1332_v44 = vld [vmem:[%s1828_s3] sm:$0xff]  ;;  %v1347_v20 = vld [vmem:[%s1832_s7 + $0x8] sm:$0xff]  ;;  %338 = vmatpush.bf16.msra.mxu3 %v1662_v19 }
  0x11   :  { %v89_v14 = vpack.c.b16 %v86_v13, %v86_v13  ;;  %v1364_v57 = vld [vmem:[%s1829_s4] ss:$0 sm:$0xff] }
  0x12   :  { %v1671_v21 = vld [vmem:[%s1831_s6] sm:$0xff]  ;;  %s1160_s6 = sshll.u32 %s1476_s30, 4  ;;  %s1161_s6 = int_to_ptr.vmem [resolvable:$true] %s1160_s6 }
  0x13   :  { %280 = vmatpush.bf16.msra.mxu1 %v1337_v25  ;;  %363 = vmatpush.bf16.msrb.mxu2 %v1621_v38 }
  0x14   :  { %147 = vmatpush.bf16.msra.mxu0 %v1329_v6  ;;  %339 = vmatpush.bf16.msra.mxu3 %v1671_v21 }
  0x17   :  { %281 = vmatpush.bf16.msra.mxu1 %v1336_v37  ;;  %364 = vmatpush.bf16.msrb.mxu2 %v1630_v40 }
  0x18   :  { %148 = vmatpush.bf16.msra.mxu0 %v1328_v7  ;;  %436 = vmatpush.bf16.msrb.mxu3 %v1347_v20 }
  0x19   :  { %340 = vmatmul.bf16.vlgmr.msra.gmra.mxu3 %v1475_v43 }
  0x1b   :  { %282 = vmatpush.bf16.msra.mxu1 %v1335_v39 }
  0x1c   :  { %149 = vmatpush.bf16.msra.mxu0 %v1327_v8 }
  0x1f   :  { %283 = vmatpush.bf16.msra.mxu1 %v1334_v41 }
  0x20   :  { %150 = vmatpush.bf16.msra.mxu0 %v1326_v9 }
  0x23   :  { %1203 = vmatmul.msk.bf16.vlgmr.msra.gmra.mxu0 %vm129_vm1, %v1324_v10  ;;  %284 = vmatpush.bf16.msra.mxu1 %v1333_v42 }
  0x24   :  { %844 = vmatpush.bf16.msrb.mxu0 %v1347_v20 }
  0x27   :  { %285 = vmatpush.bf16.msra.mxu1 %v1332_v44 }
  0x2b   :  { %572 = vmatpush.bf16.msrb.mxu1 %v1347_v20 }
  0x33   :  { %1204 = vmatmul.msk.bf16.gmra.mxu0 %vm129_vm1, %v1325_v11 }
  0x43   :  { %1205 = vmatmul.msk.bf16.gmra.mxu0 %vm129_vm1, %v89_v14 }
  0xa0   :  { %v152_v16 = vpop.f32.mrf.mxu0 }
  0xa1   :  { %v153_v17 = vadd.f32 %v1363_v15, %v152_v16 }
  0xa3   :  { %v166_v46 = vmax.f32 %v153_v17, 0.0 }
  0xa8   :  { %v154_v22 = vpop.f32.mrf.mxu0 }
  0xa9   :  { %v155_v23 = vadd.f32 %v1363_v15, %v154_v22  ;;  %v1346_v22 = vld [vmem:[%s1832_s7] sm:$0xff] }
  0xaa   :  { %573 = vmatpush.bf16.msrb.mxu1 %v1346_v22  ;;  %845 = vmatpush.bf16.msrb.mxu0 %v1346_v22 }
  0xab   :  { %v167_v24 = vmax.f32 %v155_v23, 0.0  ;;  %437 = vmatpush.bf16.msrb.mxu3 %v1346_v22 }
  0xad   :  { %172 = vrot.lane.b32.xlu0 %v167_v24, %s1472_s22 }
  0xaf   :  { %507 = vmatpush.bf16.msra.mxu3 %v1621_v38 }
  0xb0   :  { %v157_v26 = vpop.f32.mrf.mxu0 }
  0xb1   :  { %v158_v27 = vadd.f32 %v1363_v15, %v157_v26  ;;  %v341_v26 = vpop.f32.mrf.mxu3 }
  0xb3   :  { %v168_v28 = vmax.f32 %v158_v27, 0.0  ;;  %508 = vmatpush.bf16.msra.mxu3 %v1630_v40 }
  0xb5   :  { %176 = vrot.lane.b32.xlu0 %v168_v28, %s1473_s23 }
  0xb8   :  { %v159_v29 = vpop.f32.mrf.mxu0 }
  0xb9   :  { %v160_v30 = vadd.f32 %v1363_v15, %v159_v29  ;;  %v343_v28 = vpop.f32.mrf.mxu3  ;;  %v1694_v29 = vld [vmem:[%s1833_s8] ss:$0 sm:$0xff] }
  0xbb   :  { %v169_v31 = vmax.f32 %v160_v30, 0.0 }
  0xbd   :  { %180 = vrot.lane.b32.xlu1 %v169_v31, %s1474_s24 }
  0xc0   :  { %v162_v32 = vpop.f32.mrf.mxu0 }
  0xc1   :  { %v163_v33 = vadd.f32 %v1363_v15, %v162_v32 }
  0xc3   :  { %v170_v34 = vmax.f32 %v163_v33, 0.0 }
  0xc5   :  { %v190_v35 = vpack.c.bf16 %v170_v34, %v170_v34 }
  0xc7   :  { %1246 = vmatmul.msk.bf16.vlgmr.msra.gmra.mxu2 %vm183_vm2, %v190_v35 }
  0xc8   :  { %v164_v36 = vpop.f32.mrf.mxu0  ;;  %494 = vmatpush.bf16.msra.mxu2 %v1662_v19 }
  0xcc   :  { %495 = vmatpush.bf16.msra.mxu2 %v1671_v21 }
  0xd7   :  { %365 = vmatmul.bf16.vlgmr.msrb.gmra.mxu2 %v1475_v43 }
  0xd8   :  { %630 = vmatpush.bf16.msrb.mxu2 %v1662_v19 }
  0xdc   :  { %631 = vmatpush.bf16.msrb.mxu2 %v1671_v21 }
 0x11f   :  { %v173_v45 = vpop.permute.xlu0 %172 }
 0x120   :  { %v184_v48 = vsel %vm183_vm2, %v166_v46, %v173_v45 }
 0x127   :  { %v177_v47 = vpop.permute.xlu0 %176 }
 0x128   :  { %v186_v49 = vsel %vm185_vm3, %v184_v48, %v177_v47 }
 0x12f   :  { %v181_v50 = vpop.permute.xlu1 %180 }
 0x130   :  { %v188_v51 = vsel %vm187_vm4, %v186_v49, %v181_v50 }
 0x131   :  { %v189_v52 = vpack.c.bf16 %v188_v51, %v188_v51 }
 0x133   :  { %286 = vmatmul.bf16.vlgmr.msra.gmra.mxu1 %v189_v52 }
 0x134   :  { %708 = vmatpush.bf16.msra.mxu1 %v1347_v20 }
 0x138   :  { %709 = vmatpush.bf16.msra.mxu1 %v1346_v22 }
 0x14a   :  { %v300_v53 = vpop.f32.mrf.mxu2 }
 0x152   :  { %v302_v54 = vpop.f32.mrf.mxu2 }
 0x15a   :  { %v366_v55 = vpop.f32.mrf.mxu2 }
 0x162   :  { %v368_v56 = vpop.f32.mrf.mxu2 }
 0x1b0   :  { %v287_v58 = vpop.f32.mrf.mxu1 }
 0x1b1   :  { %v288_v59 = vadd.f32 %v1364_v57, %v287_v58 }
 0x1b3   :  { %v1650_v60 = vadd.f32 %v300_v53, %v288_v59 }
 0x1b5   :  { %v370_v61 = vadd.f32 %v366_v55, %v1650_v60 }
 0x1b7   :  { %1370 = vtanh.f32 %v370_v61  ;;  %v1263_v0 = vmul.f32 -1.442695, %v370_v61 }
 0x1b8   :  { %v289_v62 = vpop.f32.mrf.mxu1 }
 0x1b9   :  { %1372 = vpow2.f32 %v1263_v0 }
 0x1bd   :  { %v1371_v63 = vpop.eup %1370 }
 0x1be   :  { %393 = vrot.lane.b32.xlu1 %v1371_v63, %s1473_s23 }
 0x1bf   :  { %v1373_v1 = vpop.eup %1372 }
 0x1c0   :  { %v374_v2 = vadd.f32 1.0, %v1373_v1 }
 0x1c2   :  { %1374 = vrcp.f32 %v374_v2  ;;  %v386_v8 = vand.u32 2147483648, %v374_v2  ;;  %vm380_vm6 = vweird.f32 %v374_v2  ;;  %v384_v9 = vand.u32 2147483647, %v374_v2 }
 0x1c4   :  { %v387_v11 = vor.u32 1.1754944e-38, %v386_v8  ;;  %vm385_vm8 = vcmp.eq.f32.partialorder %v384_v9, 8.507059e+37 }
 0x1c8   :  { %v1375_v3 = vpop.eup %1374 }
 0x1c9   :  { %v376_v4 = vmul.f32 %v1375_v3, %v374_v2  ;;  %vm381_vm5 = vweird.f32 %v1375_v3 }
 0x1ca   :  { %vm382_vm7 = vmor %vm380_vm6, %vm381_vm5 }
 0x1cb   :  { %v377_v5 = vsub.f32 1.0, %v376_v4 }
 0x1cd   :  { %v378_v6 = vmul.f32 %v1375_v3, %v377_v5 }
 0x1cf   :  { %v379_v7 = vadd.f32 %v1375_v3, %v378_v6 }
 0x1d1   :  { %v383_v10 = vsel %vm382_vm7, %v1375_v3, %v379_v7 }
 0x1d2   :  { %v388_v13 = vsel %vm385_vm8, %v387_v11, %v383_v10 }
 0x1d3   :  { %v391_v15 = vmul.f32 0.0, %v388_v13 }
 0x230   :  { %v394_v12 = vpop.permute.xlu1 %393 }
 0x231   :  { %v396_v14 = vmul.f32 %v394_v12, %v388_v13 }
 0x233   :  { %398 = vrot.lane.b32.xlu2 %v396_v14, %s1472_s22 }
 0x28d   :  { %v399_v16 = vpop.permute.xlu2 %398 }
 0x28e   :  { %v1655_v17 = vadd.f32 %v399_v16, %v391_v15 }
 0x290   :  { %1376 = vtanh.f32 %v1655_v17  ;;  %v539_v11 = vrot.slane %v1655_v17, 6 }
 0x296   :  { %v1377_v18 = vpop.eup %1376 }
 0x297   :  { %404 = vrot.lane.b32.xlu2 %v1377_v18, %s1473_s23 }
 0x2f1   :  { %v405_v23 = vpop.permute.xlu2 %404 }
 0x2f2   :  { %v407_v24 = vmul.f32 %v405_v23, %v388_v13 }
 0x2f4   :  { %v408_v25 = vpack.c.bf16 %v407_v24, %v407_v24 }
 0x2f6   :  { %413 = vrot.lane.b32.xlu0 %v408_v25, %s1472_s22 }
 0x368   :  { %v414_v27 = vpop.permute.xlu0 %413 }
 0x369   :  { %1272 = vmatmul.msk.bf16.vlgmr.msrb.gmra.mxu3 %vm183_vm2, %v414_v27 }
 0x36a   :  { %643 = vmatpush.bf16.msrb.mxu3 %v1621_v38 }
 0x36e   :  { %644 = vmatpush.bf16.msrb.mxu3 %v1630_v40 }
 0x379   :  { %1275 = vmatmul.msk.bf16.vlgmr.msra.gmra.mxu3 %vm183_vm2, %v414_v27 }
 0x37a   :  { %779 = vmatpush.bf16.msra.mxu3 %v1621_v38 }
 0x37e   :  { %780 = vmatpush.bf16.msra.mxu3 %v1630_v40 }
 0x3ec   :  { %v439_v30 = vpop.f32.mrf.mxu3 }
 0x3ed   :  { %v440_v31 = vadd.f32 %v1694_v29, %v439_v30 }
 0x3ef   :  { %v443_v32 = vadd.f32 %v440_v31, %v341_v26 }
 0x3f1   :  { %1378 = vtanh.f32 %v443_v32  ;;  %v1273_v40 = vmul.f32 -1.442695, %v443_v32 }
 0x3f4   :  { %v441_v33 = vpop.f32.mrf.mxu3 }
 0x3f7   :  { %v1379_v34 = vpop.eup %1378 }
 0x3f8   :  { %466 = vrot.lane.b32.xlu2 %v1379_v34, %s1473_s23 }
 0x3fc   :  { %v510_v35 = vpop.f32.mrf.mxu3 }
 0x3fd   :  { %v515_v36 = vrot.slane %v510_v35, 6 }
 0x3ff   :  { %v517_v37 = vadd.f32 %v515_v36, %v1650_v60 }
 0x401   :  { %1380 = vtanh.f32 %v517_v37  ;;  %v1276_v49 = vmul.f32 -1.442695, %v517_v37 }
 0x402   :  { %1382 = vpow2.f32 %v1273_v40 }
 0x404   :  { %v512_v38 = vpop.f32.mrf.mxu3 }
 0x407   :  { %v1381_v39 = vpop.eup %1380 }
 0x408   :  { %543 = vrot.lane.b32.xlu1 %v1381_v39, %s1473_s23  ;;  %v1383_v41 = vpop.eup %1382 }
 0x409   :  { %v447_v42 = vadd.f32 1.0, %v1383_v41 }
 0x40b   :  { %1384 = vrcp.f32 %v447_v42  ;;  %v459_v48 = vand.u32 2147483648, %v447_v42  ;;  %vm453_vm10 = vweird.f32 %v447_v42  ;;  %v457_v50 = vand.u32 2147483647, %v447_v42 }
 0x40c   :  { %1386 = vpow2.f32 %v1276_v49 }
 0x40d   :  { %v460_v52 = vor.u32 1.1754944e-38, %v459_v48  ;;  %vm458_vm12 = vcmp.eq.f32.partialorder %v457_v50, 8.507059e+37 }
 0x411   :  { %v1385_v43 = vpop.eup %1384 }
 0x412   :  { %v449_v44 = vmul.f32 %v1385_v43, %v447_v42  ;;  %vm454_vm9 = vweird.f32 %v1385_v43  ;;  %v1387_v56 = vpop.eup %1386 }
 0x413   :  { %vm455_vm11 = vmor %vm453_vm10, %vm454_vm9  ;;  %v521_v57 = vadd.f32 1.0, %v1387_v56 }
 0x414   :  { %v450_v45 = vsub.f32 1.0, %v449_v44 }
 0x415   :  { %1388 = vrcp.f32 %v521_v57  ;;  %v533_v0 = vand.u32 2147483648, %v521_v57  ;;  %vm527_vm14 = vweird.f32 %v521_v57  ;;  %v531_v1 = vand.u32 2147483647, %v521_v57 }
 0x416   :  { %v451_v46 = vmul.f32 %v1385_v43, %v450_v45 }
 0x417   :  { %v534_v3 = vor.u32 1.1754944e-38, %v533_v0  ;;  %vm532_vm1 = vcmp.eq.f32.partialorder %v531_v1, 8.507059e+37 }
 0x418   :  { %v452_v47 = vadd.f32 %v1385_v43, %v451_v46 }
 0x41a   :  { %v456_v51 = vsel %vm455_vm11, %v1385_v43, %v452_v47 }
 0x41b   :  { %v461_v54 = vsel %vm458_vm12, %v460_v52, %v456_v51  ;;  %v1389_v58 = vpop.eup %1388 }
 0x41c   :  { %v523_v59 = vmul.f32 %v1389_v58, %v521_v57  ;;  %vm528_vm13 = vweird.f32 %v1389_v58  ;;  %v464_v7 = vmul.f32 0.0, %v461_v54 }
 0x41d   :  { %vm529_vm15 = vmor %vm527_vm14, %vm528_vm13 }
 0x41e   :  { %v524_v61 = vsub.f32 1.0, %v523_v59 }
 0x420   :  { %v525_v62 = vmul.f32 %v1389_v58, %v524_v61 }
 0x422   :  { %v526_v63 = vadd.f32 %v1389_v58, %v525_v62 }
 0x424   :  { %v530_v2 = vsel %vm529_vm15, %v1389_v58, %v526_v63 }
 0x425   :  { %v535_v5 = vsel %vm532_vm1, %v534_v3, %v530_v2 }
 0x426   :  { %v541_v12 = vmul.f32 %v539_v11, %v535_v5 }
 0x452   :  { %v467_v53 = vpop.permute.xlu2 %466 }
 0x453   :  { %v469_v55 = vmul.f32 %v467_v53, %v461_v54 }
 0x455   :  { %471 = vrot.lane.b32.xlu1 %v469_v55, %s1472_s22 }
 0x47a   :  { %v544_v4 = vpop.permute.xlu1 %543 }
 0x47b   :  { %v546_v6 = vmul.f32 %v544_v4, %v535_v5 }
 0x47d   :  { %548 = vrot.lane.b32.xlu0 %v546_v6, %s1472_s22 }
 0x4c7   :  { %v472_v8 = vpop.permute.xlu1 %471 }
 0x4c8   :  { %v1702_v9 = vadd.f32 %v472_v8, %v464_v7 }
 0x4ca   :  { %1390 = vtanh.f32 %v1702_v9 }
 0x4d0   :  { %v1391_v10 = vpop.eup %1390 }
 0x4d1   :  { %477 = vrot.lane.b32.xlu0 %v1391_v10, %s1473_s23 }
 0x4ef   :  { %v549_v13 = vpop.permute.xlu0 %548 }
 0x4f0   :  { %v1707_v14 = vadd.f32 %v549_v13, %v541_v12 }
 0x4f2   :  { %1392 = vtanh.f32 %v1707_v14 }
 0x4f8   :  { %v1393_v15 = vpop.eup %1392 }
 0x4f9   :  { %554 = vrot.lane.b32.xlu2 %v1393_v15, %s1473_s23 }
 0x543   :  { %v478_v16 = vpop.permute.xlu0 %477 }
 0x544   :  { %v1711_v18 = vmul.f32 %v478_v16, %v461_v54 }
 0x546   :  { %v481_v20 = vpack.c.bf16 %v1711_v18, %v1711_v18 }
 0x548   :  { %483 = vrot.lane.b32.xlu2 %v481_v20, %s1472_s22 }
 0x553   :  { %v555_v22 = vpop.permute.xlu2 %554 }
 0x554   :  { %v557_v23 = vmul.f32 %v555_v22, %v535_v5  ;;  %v675_v5 = vrot.slane %v1707_v14, 6 }
 0x556   :  { %v558_v17 = vpack.c.bf16 %v557_v23, %v557_v23 }
 0x558   :  { %v560_v24 = vrot.slane %v558_v17, 1 }
 0x55a   :  { %561 = vrot.lane.b32.xlu1 %v560_v24, %s1472_s22 }
 0x5a2   :  { %v484_v25 = vpop.permute.xlu2 %483 }
 0x5a3   :  { %1274 = vmatmul.msk.bf16.vlgmr.msra.gmra.mxu2 %vm183_vm2, %v484_v25 }
 0x5a4   :  { %766 = vmatpush.bf16.msra.mxu2 %v1662_v19 }
 0x5a8   :  { %767 = vmatpush.bf16.msra.mxu2 %v1671_v21 }
 0x5cc   :  { %v562_v26 = vpop.permute.xlu1 %561 }
 0x5cd   :  { %1277 = vmatmul.msk.bf16.vlgmr.msrb.gmra.mxu1 %vm183_vm2, %v562_v26  ;;  %1280 = vmatmul.msk.bf16.vlgmr.msrb.gmra.mxu3 %vm183_vm2, %v562_v26 }
 0x626   :  { %v497_v27 = vpop.f32.mrf.mxu2 }
 0x62e   :  { %v499_v28 = vpop.f32.mrf.mxu2 }
 0x64a   :  { %v575_v30 = vpop.f32.mrf.mxu1 }
 0x64b   :  { %v576_v31 = vadd.f32 %v1694_v29, %v575_v30 }
 0x64d   :  { %v579_v32 = vadd.f32 %v576_v31, %v497_v27 }
 0x64f   :  { %1394 = vtanh.f32 %v579_v32  ;;  %v1278_v38 = vmul.f32 -1.442695, %v579_v32 }
 0x650   :  { %v646_v33 = vpop.f32.mrf.mxu3 }
 0x651   :  { %v651_v34 = vrot.slane %v646_v33, 4 }
 0x652   :  { %v577_v35 = vpop.f32.mrf.mxu1 }
 0x653   :  { %v653_v36 = vadd.f32 %v651_v34, %v1650_v60 }
 0x655   :  { %v1395_v19 = vpop.eup %1394  ;;  %1396 = vtanh.f32 %v653_v36  ;;  %v1281_v39 = vmul.f32 -1.442695, %v653_v36 }
 0x656   :  { %602 = vrot.lane.b32.xlu1 %v1395_v19, %s1473_s23  ;;  %1398 = vpow2.f32 %v1278_v38 }
 0x657   :  { %1400 = vpow2.f32 %v1281_v39 }
 0x658   :  { %v648_v21 = vpop.f32.mrf.mxu3 }
 0x65b   :  { %v1397_v37 = vpop.eup %1396 }
 0x65c   :  { %679 = vrot.lane.b32.xlu0 %v1397_v37, %s1473_s23  ;;  %v1399_v40 = vpop.eup %1398 }
 0x65d   :  { %v583_v41 = vadd.f32 1.0, %v1399_v40  ;;  %v1401_v42 = vpop.eup %1400 }
 0x65e   :  { %v657_v43 = vadd.f32 1.0, %v1401_v42 }
 0x65f   :  { %1402 = vrcp.f32 %v583_v41  ;;  %v595_v52 = vand.u32 2147483648, %v583_v41  ;;  %vm589_vm5 = vweird.f32 %v583_v41  ;;  %v593_v53 = vand.u32 2147483647, %v583_v41 }
 0x660   :  { %1404 = vrcp.f32 %v657_v43  ;;  %v669_v61 = vand.u32 2147483648, %v657_v43  ;;  %vm663_vm9 = vweird.f32 %v657_v43  ;;  %v667_v63 = vand.u32 2147483647, %v657_v43 }
 0x661   :  { %v596_v56 = vor.u32 1.1754944e-38, %v595_v52  ;;  %vm594_vm7 = vcmp.eq.f32.partialorder %v593_v53, 8.507059e+37 }
 0x662   :  { %v670_v1 = vor.u32 1.1754944e-38, %v669_v61  ;;  %vm668_vm11 = vcmp.eq.f32.partialorder %v667_v63, 8.507059e+37 }
 0x665   :  { %v1403_v44 = vpop.eup %1402 }
 0x666   :  { %v585_v45 = vmul.f32 %v1403_v44, %v583_v41  ;;  %v1405_v46 = vpop.eup %1404  ;;  %vm590_vm4 = vweird.f32 %v1403_v44 }
 0x667   :  { %v659_v48 = vmul.f32 %v1405_v46, %v657_v43  ;;  %vm591_vm6 = vmor %vm589_vm5, %vm590_vm4  ;;  %vm664_vm8 = vweird.f32 %v1405_v46 }
 0x668   :  { %v586_v47 = vsub.f32 1.0, %v585_v45  ;;  %vm665_vm10 = vmor %vm663_vm9, %vm664_vm8 }
 0x669   :  { %v660_v50 = vsub.f32 1.0, %v659_v48 }
 0x66a   :  { %v587_v49 = vmul.f32 %v1403_v44, %v586_v47 }
 0x66b   :  { %v661_v54 = vmul.f32 %v1405_v46, %v660_v50 }
 0x66c   :  { %v588_v51 = vadd.f32 %v1403_v44, %v587_v49 }
 0x66d   :  { %v662_v57 = vadd.f32 %v1405_v46, %v661_v54 }
 0x66e   :  { %v592_v55 = vsel %vm591_vm6, %v1403_v44, %v588_v51 }
 0x66f   :  { %v597_v59 = vsel %vm594_vm7, %v596_v56, %v592_v55  ;;  %v666_v0 = vsel %vm665_vm10, %v1405_v46, %v662_v57 }
 0x670   :  { %v671_v2 = vsel %vm668_vm11, %v670_v1, %v666_v0  ;;  %v600_v11 = vmul.f32 %v597_v59, %v1702_v9  ;;  %vm899_vm11 = vcmask 1043456  }
 0x671   :  { %v677_v6 = vmul.f32 %v675_v5, %v671_v2 }
 0x6c8   :  { %v603_v58 = vpop.permute.xlu1 %602 }
 0x6c9   :  { %v605_v62 = vmul.f32 %v603_v58, %v597_v59 }
 0x6cb   :  { %607 = vrot.lane.b32.xlu0 %v605_v62, %s1472_s22 }
 0x6ce   :  { %v680_v3 = vpop.permute.xlu0 %679 }
 0x6cf   :  { %v682_v4 = vmul.f32 %v680_v3, %v671_v2 }
 0x6d1   :  { %684 = vrot.lane.b32.xlu2 %v682_v4, %s1472_s22 }
 0x72b   :  { %v685_v7 = vpop.permute.xlu2 %684 }
 0x72c   :  { %v1729_v8 = vadd.f32 %v685_v7, %v677_v6 }
 0x72e   :  { %1406 = vtanh.f32 %v1729_v8  ;;  %v811_v6 = vrot.slane %v1729_v8, 6 }
 0x734   :  { %v1407_v10 = vpop.eup %1406 }
 0x735   :  { %690 = vrot.lane.b32.xlu1 %v1407_v10, %s1473_s23 }
 0x73d   :  { %v608_v12 = vpop.permute.xlu0 %607 }
 0x73e   :  { %v1734_v13 = vadd.f32 %v608_v12, %v600_v11 }
 0x740   :  { %1408 = vtanh.f32 %v1734_v13 }
 0x746   :  { %v1409_v15 = vpop.eup %1408 }
 0x747   :  { %613 = vrot.lane.b32.xlu2 %v1409_v15, %s1473_s23 }
 0x7a1   :  { %v614_v14 = vpop.permute.xlu2 %613 }
 0x7a2   :  { %v1738_v16 = vmul.f32 %v614_v14, %v597_v59 }
 0x7a4   :  { %v617_v20 = vpack.c.bf16 %v1738_v16, %v1738_v16 }
 0x7a6   :  { %619 = vrot.lane.b32.xlu0 %v617_v20, %s1472_s22 }
 0x7a7   :  { %v691_v22 = vpop.permute.xlu1 %690 }
 0x7a8   :  { %v693_v23 = vmul.f32 %v691_v22, %v671_v2 }
 0x7aa   :  { %v694_v17 = vpack.c.bf16 %v693_v23, %v693_v23 }
 0x7ac   :  { %v696_v9 = vrot.slane %v694_v17, 2 }
 0x7ae   :  { %697 = vrot.lane.b32.xlu1 %v696_v9, %s1472_s22 }
 0x818   :  { %v620_v24 = vpop.permute.xlu0 %619 }
 0x819   :  { %1279 = vmatmul.msk.bf16.vlgmr.msrb.gmra.mxu2 %vm183_vm2, %v620_v24 }
 0x820   :  { %v698_v25 = vpop.permute.xlu1 %697 }
 0x821   :  { %1282 = vmatmul.msk.bf16.vlgmr.msra.gmra.mxu1 %vm183_vm2, %v698_v25  ;;  %1285 = vmatmul.msk.bf16.vlgmr.msra.gmra.mxu3 %vm183_vm2, %v698_v25 }
 0x89c   :  { %v633_v26 = vpop.f32.mrf.mxu2 }
 0x89e   :  { %v711_v27 = vpop.f32.mrf.mxu1 }
 0x89f   :  { %v712_v28 = vadd.f32 %v1694_v29, %v711_v27 }
 0x8a1   :  { %v715_v30 = vadd.f32 %v712_v28, %v633_v26 }
 0x8a3   :  { %1410 = vtanh.f32 %v715_v30  ;;  %v1283_v37 = vmul.f32 -1.442695, %v715_v30 }
 0x8a4   :  { %v635_v31 = vpop.f32.mrf.mxu2  ;;  %v782_v32 = vpop.f32.mrf.mxu3 }
 0x8a5   :  { %v787_v33 = vrot.slane %v782_v32, 2 }
 0x8a6   :  { %v713_v34 = vpop.f32.mrf.mxu1 }
 0x8a7   :  { %v789_v35 = vadd.f32 %v787_v33, %v1650_v60 }
 0x8a9   :  { %v1411_v36 = vpop.eup %1410  ;;  %1412 = vtanh.f32 %v789_v35  ;;  %v1286_v42 = vmul.f32 -1.442695, %v789_v35 }
 0x8aa   :  { %738 = vrot.lane.b32.xlu2 %v1411_v36, %s1473_s23  ;;  %1414 = vpow2.f32 %v1283_v37 }
 0x8ac   :  { %v784_v19 = vpop.f32.mrf.mxu3 }
 0x8af   :  { %v1413_v21 = vpop.eup %1412 }
 0x8b0   :  { %815 = vrot.lane.b32.xlu0 %v1413_v21, %s1473_s23  ;;  %v1415_v38 = vpop.eup %1414 }
 0x8b1   :  { %v719_v39 = vadd.f32 1.0, %v1415_v38 }
 0x8b3   :  { %1416 = vrcp.f32 %v719_v39  ;;  %v731_v45 = vand.u32 2147483648, %v719_v39  ;;  %vm725_vm13 = vweird.f32 %v719_v39  ;;  %v729_v47 = vand.u32 2147483647, %v719_v39 }
 0x8b4   :  { %1418 = vpow2.f32 %v1286_v42 }
 0x8b5   :  { %v732_v50 = vor.u32 1.1754944e-38, %v731_v45  ;;  %vm730_vm15 = vcmp.eq.f32.partialorder %v729_v47, 8.507059e+37 }
 0x8b9   :  { %v1417_v40 = vpop.eup %1416 }
 0x8ba   :  { %v721_v41 = vmul.f32 %v1417_v40, %v719_v39  ;;  %vm726_vm12 = vweird.f32 %v1417_v40  ;;  %v1419_v46 = vpop.eup %1418 }
 0x8bb   :  { %vm727_vm14 = vmor %vm725_vm13, %vm726_vm12  ;;  %v793_v49 = vadd.f32 1.0, %v1419_v46  ;;  %vm901_vm12 = vcmask 1045504  }
 0x8bc   :  { %v722_v43 = vsub.f32 1.0, %v721_v41 }
 0x8bd   :  { %1420 = vrcp.f32 %v793_v49  ;;  %v805_v59 = vand.u32 2147483648, %v793_v49  ;;  %vm799_vm4 = vweird.f32 %v793_v49  ;;  %v803_v61 = vand.u32 2147483647, %v793_v49 }
 0x8be   :  { %v723_v44 = vmul.f32 %v1417_v40, %v722_v43 }
 0x8bf   :  { %v806_v63 = vor.u32 1.1754944e-38, %v805_v59  ;;  %vm804_vm6 = vcmp.eq.f32.partialorder %v803_v61, 8.507059e+37 }
 0x8c0   :  { %v724_v60 = vadd.f32 %v1417_v40, %v723_v44 }
 0x8c2   :  { %v728_v48 = vsel %vm727_vm14, %v1417_v40, %v724_v60 }
 0x8c3   :  { %v733_v52 = vsel %vm730_vm15, %v732_v50, %v728_v48  ;;  %v1421_v54 = vpop.eup %1420  ;;  %v1348_v50 = vld [vmem:[%s1834_s9] sm:$0xff] }
 0x8c4   :  { %v795_v55 = vmul.f32 %v1421_v54, %v793_v49  ;;  %vm800_vm1 = vweird.f32 %v1421_v54  ;;  %v736_v3 = vmul.f32 %v733_v52, %v1734_v13  ;;  %v1349_v49 = vld [vmem:[%s1834_s9 + $0x8] sm:$0xff] }
 0x8c5   :  { %vm801_vm5 = vmor %vm799_vm4, %vm800_vm1  ;;  %936 = vmatpush.bf16.msrb.mxu1 %v1349_v49 }
 0x8c6   :  { %v796_v56 = vsub.f32 1.0, %v795_v55 }
 0x8c8   :  { %v797_v57 = vmul.f32 %v1421_v54, %v796_v56 }
 0x8c9   :  { %937 = vmatpush.bf16.msrb.mxu1 %v1348_v50 }
 0x8ca   :  { %v798_v58 = vadd.f32 %v1421_v54, %v797_v57 }
 0x8cc   :  { %v802_v62 = vsel %vm801_vm5, %v1421_v54, %v798_v58 }
 0x8cd   :  { %v807_v0 = vsel %vm804_vm6, %v806_v63, %v802_v62  ;;  %v1367_v63 = vld [vmem:[%s1836_s11] ss:$0 sm:$0xff] }
 0x8ce   :  { %v813_v7 = vmul.f32 %v811_v6, %v807_v0 }
 0x904   :  { %v739_v51 = vpop.permute.xlu2 %738 }
 0x905   :  { %v741_v53 = vmul.f32 %v739_v51, %v733_v52  ;;  %v890_v51 = vrot.slane %v1738_v16, 6  ;;  %v1366_v16 = vld [vmem:[%s1835_s10] ss:$0 sm:$0xff] }
 0x907   :  { %743 = vrot.lane.b32.xlu1 %v741_v53, %s1472_s22  ;;  %v898_v54 = vsel %vm139_vm0, %v1711_v18, %v890_v51 }
 0x922   :  { %v816_v1 = vpop.permute.xlu0 %815 }
 0x923   :  { %v818_v2 = vmul.f32 %v816_v1, %v807_v0 }
 0x925   :  { %820 = vrot.lane.b32.xlu2 %v818_v2, %s1472_s22 }
 0x979   :  { %v744_v4 = vpop.permute.xlu1 %743 }
 0x97a   :  { %v746_v5 = vadd.f32 %v744_v4, %v736_v3 }
 0x97c   :  { %1422 = vtanh.f32 %v746_v5 }
 0x97f   :  { %v821_v10 = vpop.permute.xlu2 %820 }
 0x980   :  { %v823_v11 = vadd.f32 %v821_v10, %v813_v7 }
 0x982   :  { %v1423_v12 = vpop.eup %1422  ;;  %1424 = vtanh.f32 %v823_v11 }
 0x983   :  { %749 = vrot.lane.b32.xlu0 %v1423_v12, %s1473_s23 }
 0x988   :  { %v1425_v15 = vpop.eup %1424 }
 0x989   :  { %826 = vrot.lane.b32.xlu1 %v1425_v15, %s1473_s23 }
 0x9f5   :  { %v750_v14 = vpop.permute.xlu0 %749 }
 0x9f6   :  { %v1757_v20 = vmul.f32 %v750_v14, %v733_v52 }
 0x9f8   :  { %v753_v13 = vpack.c.bf16 %v1757_v20, %v1757_v20  ;;  %v893_v48 = vrot.slane %v1757_v20, 4 }
 0x9fa   :  { %755 = vrot.lane.b32.xlu2 %v753_v13, %s1472_s22  ;;  %v900_v56 = vsel %vm899_vm11, %v898_v54, %v893_v48 }
 0x9fb   :  { %v827_v8 = vpop.permute.xlu1 %826 }
 0x9fc   :  { %v829_v22 = vmul.f32 %v827_v8, %v807_v0 }
 0x9fe   :  { %v830_v23 = vpack.c.bf16 %v829_v22, %v829_v22 }
 0xa00   :  { %v832_v17 = vrot.slane %v830_v23, 3 }
 0xa02   :  { %833 = vrot.lane.b32.xlu0 %v832_v17, %s1472_s22 }
 0xa54   :  { %v756_v9 = vpop.permute.xlu2 %755 }
 0xa55   :  { %1284 = vmatmul.msk.bf16.vlgmr.msra.gmra.mxu2 %vm183_vm2, %v756_v9 }
 0xa74   :  { %v834_v24 = vpop.permute.xlu0 %833 }
 0xa75   :  { %1287 = vmatmul.msk.bf16.vlgmr.msrb.gmra.mxu0 %vm183_vm2, %v834_v24 }
 0xad8   :  { %v769_v25 = vpop.f32.mrf.mxu2 }
 0xae0   :  { %v771_v26 = vpop.f32.mrf.mxu2 }
 0xaf2   :  { %v847_v27 = vpop.f32.mrf.mxu0 }
 0xaf3   :  { %v848_v28 = vadd.f32 %v1694_v29, %v847_v27 }
 0xaf5   :  { %v851_v30 = vadd.f32 %v848_v28, %v769_v25 }
 0xaf7   :  { %1426 = vtanh.f32 %v851_v30  ;;  %v1288_v33 = vmul.f32 -1.442695, %v851_v30 }
 0xaf9   :  { %1428 = vpow2.f32 %v1288_v33 }
 0xafa   :  { %v849_v31 = vpop.f32.mrf.mxu0 }
 0xafd   :  { %v1427_v32 = vpop.eup %1426 }
 0xafe   :  { %874 = vrot.lane.b32.xlu1 %v1427_v32, %s1473_s23 }
 0xaff   :  { %v1429_v34 = vpop.eup %1428 }
 0xb00   :  { %v855_v35 = vadd.f32 1.0, %v1429_v34 }
 0xb02   :  { %1430 = vrcp.f32 %v855_v35  ;;  %v867_v39 = vand.u32 2147483648, %v855_v35  ;;  %vm861_vm8 = vweird.f32 %v855_v35  ;;  %v865_v29 = vand.u32 2147483647, %v855_v35 }
 0xb04   :  { %v868_v41 = vor.u32 1.1754944e-38, %v867_v39  ;;  %vm866_vm10 = vcmp.eq.f32.partialorder %v865_v29, 8.507059e+37 }
 0xb08   :  { %v1431_v36 = vpop.eup %1430 }
 0xb09   :  { %v857_v19 = vmul.f32 %v1431_v36, %v855_v35  ;;  %vm862_vm7 = vweird.f32 %v1431_v36 }
 0xb0a   :  { %vm863_vm9 = vmor %vm861_vm8, %vm862_vm7 }
 0xb0b   :  { %v858_v21 = vsub.f32 1.0, %v857_v19 }
 0xb0d   :  { %v859_v37 = vmul.f32 %v1431_v36, %v858_v21 }
 0xb0f   :  { %v860_v38 = vadd.f32 %v1431_v36, %v859_v37 }
 0xb11   :  { %v864_v40 = vsel %vm863_vm9, %v1431_v36, %v860_v38 }
 0xb12   :  { %v869_v43 = vsel %vm866_vm10, %v868_v41, %v864_v40 }
 0xb13   :  { %v872_v60 = vmul.f32 %v869_v43, %v746_v5 }
 0xb70   :  { %v875_v42 = vpop.permute.xlu1 %874 }
 0xb71   :  { %v877_v44 = vmul.f32 %v875_v42, %v869_v43 }
 0xb73   :  { %879 = vrot.lane.b32.xlu2 %v877_v44, %s1472_s22 }
 0xbcd   :  { %v880_v45 = vpop.permute.xlu2 %879 }
 0xbce   :  { %v882_v46 = vadd.f32 %v880_v45, %v872_v60 }
 0xbd0   :  { %1432 = vtanh.f32 %v882_v46  ;;  %v1351_v46 = vld [vmem:[%s1837_s12 + $0x8] sm:$0xff] }
 0xbd1   :  { %1094 = vmatpush.bf16.msrb.mxu2 %v1351_v46 }
 0xbd6   :  { %v1433_v47 = vpop.eup %1432 }
 0xbd7   :  { %885 = vrot.lane.b32.xlu0 %v1433_v47, %s1473_s23  ;;  %v1350_v47 = vld [vmem:[%s1837_s12] sm:$0xff] }
 0xbd8   :  { %1095 = vmatpush.bf16.msrb.mxu2 %v1350_v47 }
 0xbdf   :  { %1013 = vrot.lane.b32.xlu0 %v893_v48, %s1472_s22 }
 0xc49   :  { %v886_v52 = vpop.permute.xlu0 %885 }
 0xc4a   :  { %v888_v53 = vmul.f32 %v886_v52, %v869_v43 }
 0xc4c   :  { %v896_v55 = vrot.slane %v888_v53, 2 }
 0xc4e   :  { %v902_v57 = vsel %vm901_vm12, %v900_v56, %v896_v55 }
 0xc4f   :  { %v903_v58 = vpack.c.bf16 %v902_v57, %v902_v57 }
 0xc51   :  { %913 = vrot.lane.b32.xlu1 %v903_v58, %s1472_s22  ;;  %v1014_v21 = vpop.permute.xlu0 %1013 }
 0xc59   :  { %995 = vrot.lane.b32.xlu1 %v890_v51, %s1472_s22 }
 0xcc3   :  { %v914_v59 = vpop.permute.xlu1 %913 }
 0xcc4   :  { %1297 = vmatmul.msk.bf16.vlgmr.msrb.gmra.mxu1 %vm183_vm2, %v914_v59 }
 0xccb   :  { %v996_v19 = vpop.permute.xlu1 %995 }
 0xd41   :  { %v939_v61 = vpop.f32.mrf.mxu1 }
 0xd42   :  { %v940_v62 = vadd.f32 %v1366_v16, %v939_v61 }
 0xd44   :  { %1434 = vtanh.f32 %v940_v62 }
 0xd49   :  { %v941_v0 = vpop.f32.mrf.mxu1 }
 0xd4a   :  { %v1435_v1 = vpop.eup %1434 }
 0xd4b   :  { %v948_v2 = vmul.f32 %v1435_v1, %v1367_v63 }
 0xd4d   :  { %v949_v3 = vsel %vm183_vm2, %v948_v2, 0.0 }
 0xd4e   :  { %950 = vadd.xlane.f32.xlu2 %v949_v3 }
 0xdc1   :  { %v951_v4 = vpop.xlane.xlu2 %950 }
 0xdc2   :  { %v953_v5 = vrot.slane %v951_v4, 2  ;;  %v956_v7 = vrot.slane %v951_v4, 4  ;;  %v959_v11 = vrot.slane %v951_v4, 6 }
 0xdc4   :  { %v955_v6 = vmax.f32 %v951_v4, %v953_v5  ;;  %v1353_v5 = vld [vmem:[%s1839_s14 + $0x8] sm:$0xff] }
 0xdc6   :  { %v958_v10 = vmax.f32 %v955_v6, %v956_v7  ;;  %v1352_v7 = vld [vmem:[%s1839_s14] sm:$0xff] }
 0xdc8   :  { %v961_v12 = vmax.f32 %v958_v10, %v959_v11  ;;  %v1368_v10 = vld [vmem:[%s1838_s13] ss:$0 sm:$0xff] }
 0xdca   :  { %v971_v15 = vrot.slane %v961_v12, 4  ;;  %v966_v14 = vrot.slane %v961_v12, 6  ;;  %v976_v8 = vrot.slane %v961_v12, 2  ;;  %v962_v17 = vsub.f32 %v951_v4, %v961_v12 }
 0xdcc   :  { %v973_v20 = vsub.f32 %v951_v4, %v971_v15  ;;  %v968_v13 = vsub.f32 %v951_v4, %v966_v14  ;;  %v978_v9 = vsub.f32 %v951_v4, %v976_v8  ;;  %v963_v24 = vmul.f32 1.442695, %v962_v17  ;;  %v1354_v4 = vld [vmem:[%s1839_s14 + $0x10] sm:$0xff] }
 0xdce   :  { %v974_v22 = vmul.f32 1.442695, %v973_v20  ;;  %v969_v23 = vmul.f32 1.442695, %v968_v13  ;;  %v979_v25 = vmul.f32 1.442695, %v978_v9 }
 0xdcf   :  { %v1369_v20 = vld [vmem:[%s1840_s15] ss:$0 sm:$0xff] }
 0xdd0   :  { %1436 = vpow2.f32 %v974_v22 }
 0xdd1   :  { %1438 = vpow2.f32 %v969_v23 }
 0xdd2   :  { %1440 = vpow2.f32 %v963_v24 }
 0xdd3   :  { %1442 = vpow2.f32 %v979_v25 }
 0xdd6   :  { %v1437_v26 = vpop.eup %1436 }
 0xdd7   :  { %v1439_v27 = vpop.eup %1438  ;;  %1010 = vperm.xlu1 %1362, %v1437_v26   ;;  %v1006_v33 = vrot.slane %v1437_v26, 4 }
 0xdd8   :  { %992 = vperm.xlu0 %1361, %v1439_v27   ;;  %v988_v28 = vrot.slane %v1439_v27, 2  ;;  %v1441_v30 = vpop.eup %1440 }
 0xdd9   :  { %v1443_v32 = vpop.eup %1442 }
 0xdda   :  { %v990_v31 = vadd.f32 %v1441_v30, %v988_v28  ;;  %v1024_v35 = vrot.slane %v1443_v32, 6 }
 0xddc   :  { %v1008_v34 = vadd.f32 %v1006_v33, %v990_v31 }
 0xdde   :  { %v1026_v36 = vadd.f32 %v1024_v35, %v1008_v34 }
 0xddf   :  { %1028 = vperm.xlu1 %1362, %v1443_v32  }
 0xde0   :  { %1031 = vrot.lane.b32.xlu0 %v896_v55, %s1472_s22 }
 0xde7   :  { %1043 = vperm.xlu1 %1362, %v1026_v36  }
 0xde8   :  { %983 = vperm.xlu0 %1361, %v1441_v30  }
 0xe49   :  { %v1011_v37 = vpop.permute.xlu1 %1010 }
 0xe4a   :  { %v1016_v38 = vmul.f32 %v1014_v21, %v1011_v37  ;;  %v993_v39 = vpop.permute.xlu0 %992 }
 0xe4b   :  { %v998_v29 = vmul.f32 %v996_v19, %v993_v39 }
 0xe4c   :  { %v1018_v40 = vrot.slane %v1016_v38, 4 }
 0xe4d   :  { %v1000_v41 = vrot.slane %v998_v29, 2 }
 0xe4e   :  { %1019 = vrot.lane.b32.xlu2 %v1018_v40, %s1474_s24 }
 0xe4f   :  { %1001 = vrot.lane.b32.xlu1 %v1000_v41, %s1474_s24 }
 0xe51   :  { %v1029_v42 = vpop.permute.xlu1 %1028 }
 0xe52   :  { %v1032_v43 = vpop.permute.xlu0 %1031 }
 0xe53   :  { %v1034_v44 = vmul.f32 %v1032_v43, %v1029_v42 }
 0xe55   :  { %v1036_v60 = vrot.slane %v1034_v44, 6 }
 0xe57   :  { %1037 = vrot.lane.b32.xlu0 %v1036_v60, %s1474_s24 }
 0xe59   :  { %v1044_v45 = vpop.permute.xlu1 %1043 }
 0xe5a   :  { %1444 = vrcp.f32 %v1044_v45  ;;  %v984_v51 = vpop.permute.xlu0 %983  ;;  %v1057_v57 = vand.u32 2147483648, %v1044_v45  ;;  %vm1051_vm13 = vweird.f32 %v1044_v45  ;;  %v1055_v58 = vand.u32 2147483647, %v1044_v45 }
 0xe5b   :  { %v986_v54 = vmul.f32 %v984_v51, %v1711_v18  ;;  %v1355_v18 = vld [vmem:[%s1839_s14 + $0x18] sm:$0xff]  ;;  %s1162_s14 = sshll.u32 %s1841_s16, 4  ;;  %s1163_s14 = int_to_ptr.hbm [resolvable:$true] %s1162_s14 }
 0xe5c   :  { %v1058_v62 = vor.u32 1.1754944e-38, %v1057_v57  ;;  %vm1056_vm15 = vcmp.eq.f32.partialorder %v1055_v58, 8.507059e+37  ;;  %1145 = vmatpush.bf16.msrb.mxu3 %v1355_v18 }
 0xe60   :  { %v1445_v48 = vpop.eup %1444  ;;  %1146 = vmatpush.bf16.msrb.mxu3 %v1354_v4 }
 0xe61   :  { %v1047_v49 = vmul.f32 %v1445_v48, %v1044_v45  ;;  %vm1052_vm0 = vweird.f32 %v1445_v48 }
 0xe62   :  { %vm1053_vm14 = vmor %vm1051_vm13, %vm1052_vm0 }
 0xe63   :  { %v1048_v50 = vsub.f32 1.0, %v1047_v49 }
 0xe64   :  { %1147 = vmatpush.bf16.msrb.mxu3 %v1353_v5 }
 0xe65   :  { %v1049_v52 = vmul.f32 %v1445_v48, %v1048_v50 }
 0xe67   :  { %v1050_v56 = vadd.f32 %v1445_v48, %v1049_v52 }
 0xe68   :  { %1148 = vmatpush.bf16.msrb.mxu3 %v1352_v7 }
 0xe69   :  { %v1054_v61 = vsel %vm1053_vm14, %v1445_v48, %v1050_v56 }
 0xe6a   :  { %v1059_v1 = vsel %vm1056_vm15, %v1058_v62, %v1054_v61 }
 0xea8   :  { %v1020_v59 = vpop.permute.xlu2 %1019 }
 0xec1   :  { %v1002_v53 = vpop.permute.xlu1 %1001 }
 0xec2   :  { %v1004_v55 = vadd.f32 %v1002_v53, %v986_v54 }
 0xec4   :  { %v1022_v16 = vadd.f32 %v1020_v59, %v1004_v55 }
 0xec9   :  { %v1038_v63 = vpop.permute.xlu0 %1037 }
 0xeca   :  { %v1040_v0 = vadd.f32 %v1038_v63, %v1022_v16 }
 0xecc   :  { %v1060_v2 = vmul.f32 %v1059_v1, %v1040_v0 }
 0xece   :  { %v1061_v3 = vpack.c.bf16 %v1060_v2, %v1060_v2 }
 0xed0   :  { %1071 = vrot.lane.b32.xlu1 %v1061_v3, %s1472_s22 }
 0xf42   :  { %v1072_v6 = vpop.permute.xlu1 %1071 }
 0xf43   :  { %1306 = vmatmul.msk.bf16.vlgmr.msrb.gmra.mxu2 %vm183_vm2, %v1072_v6 }
 0xfc6   :  { %v1097_v11 = vpop.f32.mrf.mxu2 }
 0xfc7   :  { %v1098_v12 = vadd.f32 %v1368_v10, %v1097_v11 }
 0xfc9   :  { %v1101_v15 = vpack.c.bf16 %v1098_v12, %v1098_v12 }
 0xfcb   :  { %1323 = vmatmul.msk.bf16.vlgmr.msrb.gmra.mxu3 %vm185_vm3, %v1101_v15 }
 0xfce   :  { %v1099_v14 = vpop.f32.mrf.mxu2 }
0x104e   :  { %v1150_v13 = vpop.f32.mrf.mxu3 }
0x104f   :  { %v1151_v8 = vadd.f32 %v1369_v20, %v1150_v13 }
0x1051   :  { %1154 = vst [vmem:[#allocation2] sm:$0x3] %v1151_v8 }
0x1052   :  { %1165 = dma.vmem_to_hbm [thread:$0]  %s1161_s6, 32, %s1163_s14, [#allocation3]  }
0x1056   :  { %v1152_v22 = vpop.f32.mrf.mxu3 }
0x1057   :  { %1470 = dma.done.wait [#allocation3], 32  }
0x1058   :  { %1471 = vsyncadd [#allocation3], 4294967264 }
0x1059   :  { %1170 = vsyncpa [#allocation3], 1 }

</bundles_post_ra>
